<compile_context>
chip_gen: v7x
topology: tpu7x:2x2x1
jax: 0.10.0
libtpu: 0.0.40
codegen_flags: <defaults>
</compile_context>

<pallas_src>
import functools
import math

import jax
import jax.numpy as jnp
from jax.experimental import pallas as pl
from jax.experimental.pallas import tpu as pltpu

_LANES = 128
_FAST_PATH_ELEMS = 64 * 1024          # below this, pallas_call overhead dominates
_VMEM_BUDGET = 8 * 1024 * 1024        # total double-buffered block budget (bytes)
_MIN_BLOCK_ELEMS = 32 * 1024          # keep >=128 KiB f32 per grid step


def _round_up(x, m):
    return ((x + m - 1) // m) * m


def _make_sum_kernel(num_full, has_scalar, out_dtype):
    """Kernel summing `num_full` same-shaped blocks (+ optional SMEM scalar)."""

    def kernel(*refs):
        # refs = (full_0, ..., full_{K-1}[, scalar_smem], out)
        out_ref = refs[-1]
        acc = refs[0][...].astype(jnp.float32)
        for r in refs[1:num_full]:                 # small static K -> unrolled vadds
            acc = acc + r[...].astype(jnp.float32)
        if has_scalar:
            acc = acc + refs[num_full][0, 0]       # folded scalar terms (SMEM)
        out_ref[...] = acc.astype(out_dtype)

    return kernel


def _plan_row_tile(rows, cols, per_block_bytes, mult):
    """Rows per block: multiple of `mult`, VMEM-budgeted, >=2 grid steps if possible."""
    max_rows = max(mult, (per_block_bytes // (cols * 4)) // mult * mult)
    min_rows = _round_up(max(1, _MIN_BLOCK_ELEMS // cols), mult)
    half_rows = _round_up(pl.cdiv(rows, 2), mult)          # let v7x's 2 TCs split
    tile = min(max(half_rows, min_rows), max_rows)
    return min(tile, _round_up(rows, mult))


def _jnp_sum(full_terms, scalar_sum, out_shape, out_dtype):
    """Fused plain-JAX fallback (tiny / awkward shapes): f32 accumulate, cast."""
    acc = jnp.zeros(out_shape, jnp.float32)
    for t in full_terms:
        acc = acc + t.astype(jnp.float32)
    if scalar_sum is not None:
        acc = acc + scalar_sum
    return acc.astype(out_dtype)


def valid_loss(loss, batch_cnt=None, add_loss_adv=None):
    """Pallas equivalent of BaseModel.valid_loss: sum of non-None loss terms."""
    del batch_cnt, add_loss_adv  # unused by the reference implementation
    terms = [l for l in loss.values() if l is not None]
    if not terms:
        return 0.0  # PyTorch returns the python float 0.0 in this case

    arrs = [jnp.asarray(t) for t in terms]
    out_shape = jnp.broadcast_shapes(*[a.shape for a in arrs])

    # Result dtype: promotion of the (strong-typed) term dtypes, like torch's
    # `total_loss = total_loss + l`; python scalars stay weak.
    dtypes = [a.dtype for t, a in zip(terms, arrs) if hasattr(t, "dtype")]
    out_dtype = functools.reduce(jnp.promote_types, dtypes) if dtypes else jnp.float32
    if not jnp.issubdtype(out_dtype, jnp.inexact):
        out_dtype = jnp.float32

    n = math.prod(out_shape)
    if n == 0:
        return jnp.zeros(out_shape, out_dtype)  # zero-sized loss map

    # Size-1 terms fold into one scalar (never materialized to the full shape).
    scalar_sum = None
    scalar_terms = [a for a in arrs if a.size == 1]
    if scalar_terms:
        s = jnp.float32(0.0)
        for a in scalar_terms:
            s = s + a.astype(jnp.float32).reshape(())
        scalar_sum = s

    # Non-scalar partial-shape terms are rare; broadcast them (materializes).
    full_terms = [a if a.shape == out_shape else jnp.broadcast_to(a, out_shape)
                  for a in arrs if a.size != 1]

    if not full_terms:
        # Realistic BaseModel case: every loss term is a scalar.
        return jnp.broadcast_to(scalar_sum.astype(out_dtype), out_shape)

    # ---- decide fast path vs. Pallas kernel path --------------------------
    cols = out_shape[-1]
    rows = n // cols
    num_bufs = len(full_terms) + 1                      # K inputs + 1 output
    per_block_bytes = _VMEM_BUDGET // (2 * num_bufs)    # double-buffered
    itemsizes = [a.dtype.itemsize for a in full_terms] + [jnp.dtype(out_dtype).itemsize]
    mult = 8 * max(1, 4 // min(itemsizes))              # f32->8, bf16->16, int8->32

    use_kernel = (
        n > _FAST_PATH_ELEMS
        and cols >= _LANES                              # lane-dense blocks
        and mult * cols * 4 <= per_block_bytes          # one block row-group fits VMEM
    )
    if not use_kernel:
        return _jnp_sum(full_terms, scalar_sum, out_shape, out_dtype)

    # Native-layout 2-D view: rank-2 is a no-op; rank>2 collapses leading dims.
    flat = [a.reshape(rows, cols) for a in full_terms]

    tile_r = _plan_row_tile(rows, cols, per_block_bytes, mult)
    grid = (pl.cdiv(rows, tile_r),)
    has_scalar = scalar_sum is not None

    in_specs = [pl.BlockSpec((tile_r, cols), lambda i: (i, 0)) for _ in flat]
    args = list(flat)
    if has_scalar:
        in_specs.append(pl.BlockSpec(memory_space=pltpu.MemorySpace.SMEM))
        args.append(scalar_sum.reshape(1, 1))

    total = pl.pallas_call(
        _make_sum_kernel(len(flat), has_scalar, out_dtype),
        out_shape=jax.ShapeDtypeStruct((rows, cols), out_dtype),
        grid=grid,
        in_specs=in_specs,
        out_specs=pl.BlockSpec((tile_r, cols), lambda i: (i, 0)),
        compiler_params=pltpu.CompilerParams(
            dimension_semantics=("parallel",),          # independent tiles -> megacore
        ),
    )(*args)

    return total.reshape(out_shape)


def model_sel_loss(loss, batch_cnt=None):
    """Pallas equivalent of BaseModel.model_sel_loss (delegates to valid_loss)."""
    return valid_loss(loss, batch_cnt)


if __name__ == "__main__":
    key = jax.random.PRNGKey(0)

    # --- Case 1: realistic BaseModel usage -- every loss term is a scalar. ----
    k1, k2 = jax.random.split(key, 2)
    scalar_losses = {
        "nll": jax.random.uniform(k1, (), dtype=jnp.float32),
        "pi_kl": jax.random.uniform(k2, (), dtype=jnp.float32).astype(jnp.bfloat16),
        "b_pr": jnp.float32(0.01),
        "diversity": None,
    }
    out1 = jax.block_until_ready(valid_loss(scalar_losses))
    ref1 = jnp.float32(0.0)
    for v in scalar_losses.values():
        if v is not None:
            ref1 = ref1 + jnp.asarray(v, jnp.float32)
    assert out1.shape == ()
    assert jnp.allclose(jnp.asarray(out1, jnp.float32), ref1, atol=1e-5, rtol=1e-5)

    # --- Case 2: per-token loss maps -- exercises the Pallas kernel path. -----
    B, T = 128, 2048
    k3, k4, k5 = jax.random.split(key, 3)
    loss_dict = {
        "nll": jax.random.uniform(k3, (B, T), dtype=jnp.float32),
        "kl": (0.5 * jax.random.uniform(k4, (B, T), dtype=jnp.float32)).astype(
            jnp.bfloat16
        ),
        "aux": jax.random.normal(k5, (B, T), dtype=jnp.float32) ** 2,
        "reg": jnp.float32(0.01),   # scalar term -> folded, passed via SMEM
        "adv": None,                # must be skipped
    }
    total = jax.block_until_ready(valid_loss(loss_dict))

    ref = jnp.zeros((B, T), jnp.float32)
    for v in loss_dict.values():
        if v is not None:
            ref = ref + jnp.asarray(v, jnp.float32)

    assert total.shape == (B, T)
    assert total.dtype == jnp.float32
    assert jnp.allclose(total, ref, atol=1e-5, rtol=1e-5)

    sel = jax.block_until_ready(model_sel_loss(loss_dict, batch_cnt=None))
    assert jnp.allclose(sel, ref, atol=1e-5, rtol=1e-5)

    print("KERNEL_OK")
</pallas_src>

<mosaic_0001>
module attributes {stable_mosaic.version = 11 : i64} {
  func.func @kernel(%arg0: i32, %arg1: memref<64x2048xf32, #tpu.memory_space<vmem>>, %arg2: memref<64x2048xbf16, #tpu.memory_space<vmem>>, %arg3: memref<64x2048xf32, #tpu.memory_space<vmem>>, %arg4: memref<1x1xf32, #tpu.memory_space<smem>>, %arg5: memref<64x2048xf32, #tpu.memory_space<vmem>>) attributes {dimension_semantics = [#tpu.dimension_semantics<parallel>], iteration_bounds = array<i64: 2>, scalar_prefetch = 0 : i64, scratch_operands = 0 : i64, tpu.core_type = #tpu.core_type<tc>, window_params = [{transform_indices = @transform_0, window_bounds = array<i64: 64, 2048>}, {transform_indices = @transform_1, window_bounds = array<i64: 64, 2048>}, {transform_indices = @transform_2, window_bounds = array<i64: 64, 2048>}, {transform_indices = @transform_3, window_bounds = array<i64: 1, 1>}, {transform_indices = @transform_4, window_bounds = array<i64: 64, 2048>}]} {
    %c0 = arith.constant 0 : index
    %c0_0 = arith.constant 0 : index
    %0 = vector.load %arg1[%c0, %c0_0] : memref<64x2048xf32, #tpu.memory_space<vmem>>, vector<64x2048xf32>
    %c0_1 = arith.constant 0 : index
    %c0_2 = arith.constant 0 : index
    %1 = vector.load %arg2[%c0_1, %c0_2] : memref<64x2048xbf16, #tpu.memory_space<vmem>>, vector<64x2048xbf16>
    %2 = arith.extf %1 : vector<64x2048xbf16> to vector<64x2048xf32>
    %3 = arith.addf %0, %2 : vector<64x2048xf32>
    %c0_3 = arith.constant 0 : index
    %c0_4 = arith.constant 0 : index
    %4 = vector.load %arg3[%c0_3, %c0_4] : memref<64x2048xf32, #tpu.memory_space<vmem>>, vector<64x2048xf32>
    %5 = arith.addf %3, %4 : vector<64x2048xf32>
    %c0_5 = arith.constant 0 : index
    %c0_6 = arith.constant 0 : index
    %6 = memref.load %arg4[%c0_5, %c0_6] : memref<1x1xf32, #tpu.memory_space<smem>>
    %7 = vector.broadcast %6 : f32 to vector<64x2048xf32>
    %8 = arith.addf %5, %7 : vector<64x2048xf32>
    %c0_7 = arith.constant 0 : index
    %c0_8 = arith.constant 0 : index
    %9 = vector.load %arg5[%c0_7, %c0_8] : memref<64x2048xf32, #tpu.memory_space<vmem>>, vector<64x2048xf32>
    tpu.vector_store %arg5[%c0_7, %c0_8], %8 {strides = array<i32>} : memref<64x2048xf32, #tpu.memory_space<vmem>>, vector<64x2048xf32>,
    return
  }
  func.func @transform_0(%arg0: i32) -> (i32, i32) {
    %c0_i32 = arith.constant 0 : i32
    %c0_i32_0 = arith.constant 0 : i32
    return %arg0, %c0_i32 : i32, i32
  }
  func.func @transform_1(%arg0: i32) -> (i32, i32) {
    %c0_i32 = arith.constant 0 : i32
    %c0_i32_0 = arith.constant 0 : i32
    return %arg0, %c0_i32 : i32, i32
  }
  func.func @transform_2(%arg0: i32) -> (i32, i32) {
    %c0_i32 = arith.constant 0 : i32
    %c0_i32_0 = arith.constant 0 : i32
    return %arg0, %c0_i32 : i32, i32
  }
  func.func @transform_3(%arg0: i32) -> (i32, i32) {
    %c0_i32 = arith.constant 0 : i32
    %c0_i32_0 = arith.constant 0 : i32
    %c0_i32_1 = arith.constant 0 : i32
    return %c0_i32, %c0_i32_0 : i32, i32
  }
  func.func @transform_4(%arg0: i32) -> (i32, i32) {
    %c0_i32 = arith.constant 0 : i32
    %c0_i32_0 = arith.constant 0 : i32
    return %arg0, %c0_i32 : i32, i32
  }
}

</mosaic_0001>

<bundles_post_ra>
// kernel: tpu_custom_call.1
= control target key start
LH: loop header
LB: loop body
LE: loop exit
PB: predicated region body
PF: predicated region fallthrough
CT: control target
= control target key end

     0   :  { %s2534_s0 = inlined_call_operand.hbm [shape: f32[128,2048], index: 0, kind: input, shape index: {}]   ;;  %s2535_s1 = inlined_call_operand.hbm [shape: bf16[128,2048], index: 1, kind: input, shape index: {}]   ;;  %s2536_s2 = inlined_call_operand.hbm [shape: f32[128,2048], index: 2, kind: input, shape index: {}]   ;;  %s2537_s3 = inlined_call_operand.<no memory space> [shape: f32[1,1], index: 3, kind: input, shape index: {}]   ;;  %s2538_s4 = inlined_call_operand.hbm [shape: f32[128,2048], index: 4, kind: output, shape index: {}]  }
   0x1   :  { %2541 = sst [smem:[#allocation13_spill]] %s2534_s0 }
   0x2   :  { %9 = sst [smem:[#allocation2]] %s2537_s3 }
   0x3   :  { %10 = vsyncpa [#allocation4], 0 }
   0x4   :  { %12 = vsyncpa [#allocation4 + $0x1], 0 }
   0x5   :  { %13 = vsyncpa [#allocation7], 0 }
   0x6   :  { %15 = vsyncpa [#allocation7 + $0x1], 0 }
   0x7   :  { %16 = vsyncpa [#allocation5], 0 }
   0x8   :  { %18 = vsyncpa [#allocation5 + $0x1], 0  ;;  %s1690_s17 = smov 0   ;;  %s1692_s18 = smov 0  }
   0x9   :  { %s1694_s19 = smov 0   ;;  %s1696_s20 = smov 0  }
   0xa LB: > { %s1711_s3 = sadd.s32 4294967295, %s1650_s20   ;;  %s1394_s21 = sadd.s32 4294967294, %s1650_s20   ;;  %s1650_s20 = sphi %s1696_s20, %s2558_s20   ;;  %s1646_s19 = sphi %s1694_s19, %s2557_s19   ;;  %s1642_s18 = sphi %s1692_s18, %s2556_s18   ;;  %s1638_s17 = sphi %s1690_s17, %s2555_s17  }
   0xb   : > { %s1715_s22 = sadd.s32 1, %s1650_s20   ;;  %s31_s23 = sadd.s32 1, %s1646_s19 }
   0xc   : > { %s28_s24 = ssub.s32 %s1650_s20, %s1715_s22  ;;  %p38_p0 = scmp.ne.s32.totalorder %s1646_s19, %s1642_s18 }
   0xd   : > { %p29_p1 = scmp.eq.s32.totalorder %s28_s24, 0  ;;  %p39_p2 = scmp.eq.s32.totalorder %s1650_s20, 0 }
   0xe   : > { %p44_p3 = scmp.ne.s32.totalorder %s1642_s18, %s1638_s17  ;;  %p45_p4 = scmp.eq.s32.totalorder %s1711_s3, 0 }
   0xf   : > { %s1727_s25 = scalar_select %p29_p1, %s1646_s19, %s31_s23  }
  0x10   : > { %p40_p5 = por %p39_p2, %p38_p0  ;;  %p1729_p6 = por %p45_p4, %p44_p3 }
  0x11   : > { %p141_p7 = scmp.eq.s32.totalorder %s1711_s3, 1  ;;  %p147_p8 = scmp.eq.s32.totalorder %s1394_s21, 1 }
  0x12   : > { %s2542_s26 = scalar_select %p1729_p6, 1, 0 }
  0x13   : > { %p1450_p10 = scmp.lt.s32.totalorder %s1650_s20, 2  ;;  %p1736_p11 = por %p141_p7, %p38_p0 }
  0x14   : > { %p1740_p12 = por %p147_p8, %p44_p3  ;;  %s1745_s29 = sand.u32 1, %s1646_s19  }
  0x15   : > { %s2543_s27 = scalar_select %p1736_p11, 1, 0 }
  0x16   : > { %s2544_s28 = scalar_select %p1740_p12, 1, 0 }
  0x17   : > { %p1747_p13 = pnand %p1450_p10, %p40_p5  ;;  %s192_s5 = sand.u32 1, %s1650_s20  }
  0x18   : > { %s1401_s6 = sshll.u32 %s1745_s29, 9  ;;  %s1423_s7 = sshll.u32 %s1650_s20, 13 }
  0x19   : > { %s1757_s10 = scalar_lea.hbm %s2535_s1, %s1423_s7  ;;  %s196_s11 = scalar_lea.vmem [#allocation6], %s1401_s6 }
  0x1a   : > { %s204_s12 = sshll.u32 %s196_s11, 4  ;;  %s1762_s13 = scalar_lea.sflag [#allocation7], %s192_s5  ;;  %s1759_s12 = int_to_ptr.vmem [resolvable:$true] %s204_s12 }
  0x1b   : > { %s1490_s14 = scalar_lea.hbm %s1757_s10, 8192  ;;  %p1768_p2 = pneg %p1747_p13 }
  0x1c   : > { %p1491_p1 = scmp.ne.s32.totalorder %s1757_s10, %s1490_s14  ;;  %s1495_s23 = scalar_lea.hbm %s2535_s1, 16384 }
  0x1d   : > { %p1496_p5 = scmp.lt.u32.totalorder %s1757_s10, %s2535_s1  ;;  %p1497_p7 = scmp.lt.u32.totalorder %s1495_s23, %s1490_s14 }
  0x1e   : > { %p1493_p3 = pnand %p1768_p2, %p1491_p1  ;;  %p1499_p10 = scmp.lt.u32.totalorder %s1490_s14, %s1757_s10 }
  0x1f   : > { %p1498_p8 = por %p1497_p7, %p1496_p5 }
  0x20   : > { %p1494_p4 = pneg %p1493_p3 }
  0x21   : > { %p1500_p9 = por %p1499_p10, %p1498_p8 }
  0x23   : > { %p1501_p0 = pnand %p1500_p9, %p1494_p4 }
  0x25   : > { %1504 = shalt.err (!%p1501_p0)
}
  0x26   : > { %s1505_s5 = scalar_lea.vmem %s1759_s12, 8192  ;;  %s1652_s7 = smov [#allocation6]  }
  0x27   : > { %p1506_p1 = scmp.ne.s32.totalorder %s1759_s12, %s1505_s5  ;;  %s1510_s8 = sshll.u32 %s1652_s7, 4  ;;  %s1511_s8 = int_to_ptr.vmem [resolvable:$false] %s1510_s8 }
  0x28   : > { %s1512_s9 = scalar_lea.vmem %s1511_s8, 16384  ;;  %p1513_p11 = scmp.lt.s32.totalorder %s1759_s12, %s1511_s8 }
  0x29   : > { %p1508_p3 = pnand %p1506_p1, %p1768_p2  ;;  %p1514_p6 = scmp.lt.s32.totalorder %s1512_s9, %s1505_s5 }
  0x2b   : > { %p1509_p12 = pneg %p1508_p3  ;;  %p1515_p5 = por %p1514_p6, %p1513_p11 }
  0x2d   : > { %p1516_p7 = pnand %p1515_p5, %p1509_p12 }
  0x2f   : > { %1519 = shalt.err (!%p1516_p7)
}
  0x30   : > { %s1653_s11 = smov 1024   ;;  %s1654_s14 = smov 64  }
  0x31   : > { %1442 = dma.hbm_to_vmem [thread:$0]  (!%p1747_p13), %s1757_s10, 8192, %s1759_s12, %s1762_s13, %s1653_s11, %s1653_s11, %s1654_s14  }
  0x32   : > { %p234_p9 = scmp.lt.s32.totalorder %s1650_s20, 3  ;;  %s1397_s16 = sshll.u32 %s1745_s29, 10 }
  0x33   : > { %s1421_s21 = sshll.u32 %s1650_s20, 14  ;;  %p2547_p6 = scmp.ge.s32.totalorder %s1650_s20, 1 }
  0x34   : > { %s2549_s0 = sld [smem:[#allocation13_spill]]  ;;  %s174_s10 = scalar_lea.vmem [#allocation3], %s1397_s16 }
  0x35   : > { %p1797_p11 = pnand %p2547_p6, %p234_p9  ;;  %s182_s12 = sshll.u32 %s174_s10, 4  ;;  %s1810_s12 = int_to_ptr.vmem [resolvable:$true] %s182_s12 }
  0x36   : > { %s171_s7 = scalar_lea.sflag [#allocation4], %s1745_s29 }
  0x37   : > { %s2548_s23 = scalar_select %p1797_p11, 1, 0 }
  0x3a   : > { %s1806_s5 = scalar_lea.hbm %s2549_s0, %s1421_s21  ;;  %s1525_s14 = scalar_lea.hbm %s2549_s0, 32768 }
  0x3b   : > { %s1520_s8 = scalar_lea.hbm %s1806_s5, 16384  ;;  %p1526_p8 = scmp.lt.u32.totalorder %s1806_s5, %s2549_s0 }
  0x3c   : > { %p1521_p12 = scmp.ne.s32.totalorder %s1806_s5, %s1520_s8  ;;  %p1527_p10 = scmp.lt.u32.totalorder %s1525_s14, %s1520_s8 }
  0x3d   : > { %p1529_p3 = scmp.lt.u32.totalorder %s1520_s8, %s1806_s5 }
  0x3e   : > { %p1523_p0 = pnand %p1521_p12, %p1768_p2  ;;  %p1528_p1 = por %p1527_p10, %p1526_p8 }
  0x40   : > { %p1524_p4 = pneg %p1523_p0  ;;  %p1530_p5 = por %p1529_p3, %p1528_p1 }
  0x42   : > { %p1531_p7 = pnand %p1530_p5, %p1524_p4 }
  0x44   : > { %1534 = shalt.err (!%p1531_p7)
}
  0x45   : > { %s1535_s10 = scalar_lea.vmem %s1810_s12, 16384  ;;  %s1655_s9 = smov [#allocation3]  }
  0x46   : > { %p1536_p9 = scmp.ne.s32.totalorder %s1810_s12, %s1535_s10  ;;  %s1540_s11 = sshll.u32 %s1655_s9, 4  ;;  %s1541_s11 = int_to_ptr.vmem [resolvable:$false] %s1540_s11 }
  0x47   : > { %s1542_s24 = scalar_lea.vmem %s1541_s11, 32768  ;;  %p1543_p0 = scmp.lt.s32.totalorder %s1810_s12, %s1541_s11 }
  0x48   : > { %p1538_p6 = pnand %p1536_p9, %p1768_p2  ;;  %p1544_p11 = scmp.lt.s32.totalorder %s1542_s24, %s1535_s10 }
  0x4a   : > { %p1539_p12 = pneg %p1538_p6  ;;  %p1545_p8 = por %p1544_p11, %p1543_p0 }
  0x4c   : > { %p1546_p10 = pnand %p1545_p8, %p1539_p12 }
  0x4e   : > { %1549 = shalt.err (!%p1546_p10)
}
  0x4f   : > { %s1656_s8 = smov 2048   ;;  %s1657_s14 = smov 128  }
  0x50   : > { %1439 = dma.hbm_to_vmem [thread:$0]  (!%p1747_p13), %s1806_s5, 16384, %s1810_s12, %s171_s7, %s1656_s8, %s1656_s8, %s1657_s14  }
  0x51   : > { %s1844_s9 = scalar_lea.hbm %s2536_s2, %s1421_s21  ;;  %s218_s11 = scalar_lea.vmem [#allocation8], %s1397_s16 }
  0x52   : > { %s226_s24 = sshll.u32 %s218_s11, 4  ;;  %s1550_s0 = scalar_lea.hbm %s1844_s9, 16384  ;;  %s1848_s24 = int_to_ptr.vmem [resolvable:$true] %s226_s24 }
  0x53   : > { %p1551_p11 = scmp.ne.s32.totalorder %s1844_s9, %s1550_s0  ;;  %s1555_s7 = scalar_lea.hbm %s2536_s2, 32768 }
  0x54   : > { %p1556_p3 = scmp.lt.u32.totalorder %s1844_s9, %s2536_s2  ;;  %p1557_p5 = scmp.lt.u32.totalorder %s1555_s7, %s1550_s0 }
  0x55   : > { %p1553_p4 = pnand %p1551_p11, %p1768_p2  ;;  %p1559_p9 = scmp.lt.u32.totalorder %s1550_s0, %s1844_s9 }
  0x56   : > { %p1558_p7 = por %p1557_p5, %p1556_p3 }
  0x57   : > { %p1554_p1 = pneg %p1553_p4 }
  0x58   : > { %p1560_p6 = por %p1559_p9, %p1558_p7 }
  0x5a   : > { %p1561_p12 = pnand %p1560_p6, %p1554_p1 }
  0x5c   : > { %1564 = shalt.err (!%p1561_p12)
}
  0x5d   : > { %s1565_s29 = scalar_lea.vmem %s1848_s24, 16384  ;;  %s1658_s16 = smov [#allocation8]  }
  0x5e   : > { %p1566_p0 = scmp.ne.s32.totalorder %s1848_s24, %s1565_s29  ;;  %s1570_s10 = sshll.u32 %s1658_s16, 4  ;;  %s1571_s10 = int_to_ptr.vmem [resolvable:$false] %s1570_s10 }
  0x5f   : > { %s1572_s11 = scalar_lea.vmem %s1571_s10, 32768  ;;  %p1573_p11 = scmp.lt.s32.totalorder %s1848_s24, %s1571_s10 }
  0x60   : > { %p1568_p8 = pnand %p1566_p0, %p1768_p2  ;;  %p1574_p4 = scmp.lt.s32.totalorder %s1572_s11, %s1565_s29 }
  0x62   : > { %p1569_p10 = pneg %p1568_p8  ;;  %p1575_p3 = por %p1574_p4, %p1573_p11 }
  0x64   : > { %p1576_p5 = pnand %p1575_p3, %p1569_p10 }
  0x66   : > { %1579 = shalt.err (!%p1576_p5)
}
  0x67   : > { %1445 = dma.hbm_to_vmem [thread:$0]  (!%p1747_p13), %s1844_s9, 16384, %s1848_s24, %s1762_s13, %s1656_s8, %s1656_s8, %s1657_s14  }
  0x68   : > { %p2550_p2 = scmp.ne.s32.totalorder %s2548_s23, 0 }
  0x69   : > { %s1878_s0 = sand.u32 (!%p2550_p2), 1, %s1642_s18   ;;  %p2551_p1 = scmp.ne.s32.totalorder (!%p2550_p2), %s2542_s26, 0 }
  0x6a   : > { %238 = sbr.rel (%p2550_p2) target bundleno = 267 (0x10b), region = 36  ;;  %s1881_s15 = sshll.u32 (!%p2550_p2), %s1878_s0, 10 }
  0x6b   : > { %s241_s30 = scalar_lea.sflag (!%p2550_p2), [#allocation4], %s1878_s0  ;;  %s1885_s5 = scalar_lea.vmem (!%p2550_p2), [#allocation3], %s1881_s15 }
  0x71   : > { %1625 = dma.done.wait (%p2551_p1), %s241_s30, 16384  }
  0x72   : > { %1627 = vsyncadd (%p2551_p1), %s241_s30, 4294950912  ;;  %s249_s13 = sand.u32 1, %s1711_s3   ;;  %s1411_s23 = sshll.u32 %s1878_s0, 9 }
  0x73   : > { %s250_s8 = scalar_lea.sflag [#allocation7], %s249_s13  ;;  %s1893_s14 = scalar_lea.vmem [#allocation6], %s1411_s23 }
  0x74   : > { %1629 = dma.done.wait (%p2551_p1), %s250_s8, 24576  }
  0x75   : > { %1631 = vsyncadd (%p2551_p1), %s250_s8, 4294942720  ;;  %s1005_s9 = sld [smem:[#allocation2]]  ;;  %v301_v0 = vld [vmem:[%s1885_s5] sm:$0xff]  ;;  %s1902_s24 = scalar_lea.vmem [#allocation8], %s1881_s15  ;;  %v302_v4 = vld [vmem:[%s1885_s5 + $0x8] sm:$0xff] }
  0x76   : > { %v429_v1 = vld [vmem:[%s1893_s14] sm:$0xff]  ;;  %v750_v6 = vld [vmem:[%s1902_s24 + $0x8] sm:$0xff]  ;;  %v303_v7 = vld [vmem:[%s1885_s5 + $0x10] sm:$0xff]  ;;  %s1931_s26 = scalar_lea.vmem [#allocation9], %s1881_s15  ;;  %s1427_s12 = sshll.u32 %s1711_s3, 14 }
  0x77   : > { %v493_v2 = vunpack.c.l.bf16 %v429_v1  ;;  %v749_v3 = vld [vmem:[%s1902_s24] sm:$0xff]  ;;  %v494_v5 = vunpack.c.h.bf16 %v429_v1  ;;  %v430_v8 = vld [vmem:[%s1893_s14 + $0x8] sm:$0xff]  ;;  %v304_v9 = vld [vmem:[%s1885_s5 + $0x18] sm:$0xff]  ;;  %s1278_s7 = sshll.u32 %s1931_s26, 4  ;;  %s2482_s6 = scalar_lea.hbm %s2538_s4, %s1427_s12  ;;  %s2484_s7 = int_to_ptr.vmem [resolvable:$true] %s1278_s7 }
  0x78   : > { %v495_v12 = vunpack.c.l.bf16 %v430_v8  ;;  %v751_v13 = vld [vmem:[%s1902_s24 + $0x10] sm:$0xff]  ;;  %v496_v14 = vunpack.c.h.bf16 %v430_v8  ;;  %v305_v15 = vld [vmem:[%s1885_s5 + $0x20] sm:$0xff]  ;;  %v752_v18 = vld [vmem:[%s1902_s24 + $0x18] sm:$0xff]  ;;  %s1264_s29 = scalar_lea.sflag [#allocation5], %s1878_s0  ;;  %s1580_s16 = scalar_lea.vmem %s2484_s7, 16384 }
  0x79   : > { %v621_v10 = vadd.f32 %v493_v2, %v301_v0  ;;  %v622_v11 = vadd.f32 %v494_v5, %v302_v4  ;;  %v431_v16 = vld [vmem:[%s1893_s14 + $0x10] sm:$0xff]  ;;  %v753_v20 = vld [vmem:[%s1902_s24 + $0x20] sm:$0xff]  ;;  %v306_v21 = vld [vmem:[%s1885_s5 + $0x28] sm:$0xff]  ;;  %p1581_p13 = scmp.ne.s32.totalorder %s2484_s7, %s1580_s16  ;;  %p2552_p7 = scmp.ne.s32.totalorder %s2543_s27, 0 }
  0x7a   : > { %v497_v19 = vunpack.c.l.bf16 %v431_v16  ;;  %v498_v22 = vunpack.c.h.bf16 %v431_v16  ;;  %v623_v25 = vadd.f32 %v495_v12, %v303_v7  ;;  %v624_v26 = vadd.f32 %v496_v14, %v304_v9  ;;  %v754_v27 = vld [vmem:[%s1902_s24 + $0x28] sm:$0xff]  ;;  %v307_v28 = vld [vmem:[%s1885_s5 + $0x30] sm:$0xff]  ;;  %v432_v29 = vld [vmem:[%s1893_s14 + $0x18] sm:$0xff]  ;;  %s1659_s10 = smov [#allocation9]  }
  0x7b   : > { %v1913_v17 = vstv %s1005_s9  ;;  %v877_v23 = vadd.f32 %v749_v3, %v621_v10  ;;  %v878_v24 = vadd.f32 %v750_v6, %v622_v11  ;;  %v499_v32 = vunpack.c.l.bf16 %v432_v29  ;;  %v308_v33 = vld [vmem:[%s1885_s5 + $0x38] sm:$0xff]  ;;  %v755_v39 = vld [vmem:[%s1902_s24 + $0x30] sm:$0xff]  ;;  %v433_v41 = vld [vmem:[%s1893_s14 + $0x20] sm:$0xff]  ;;  %p1582_p9 = pnand %p1581_p13, %p2552_p7  ;;  %s1584_s11 = sshll.u32 %s1659_s10, 4  ;;  %s1585_s11 = int_to_ptr.vmem [resolvable:$false] %s1584_s11 }
  0x7c   : > { %v625_v30 = vadd.f32 %v497_v19, %v305_v15  ;;  %v626_v31 = vadd.f32 %v498_v22, %v306_v21  ;;  %v500_v34 = vunpack.c.h.bf16 %v432_v29  ;;  %v879_v37 = vadd.f32 %v751_v13, %v623_v25  ;;  %v756_v40 = vld [vmem:[%s1902_s24 + $0x38] sm:$0xff]  ;;  %v309_v46 = vld [vmem:[%s1885_s5 + $0x40] sm:$0xff]  ;;  %v310_v47 = vld [vmem:[%s1885_s5 + $0x48] sm:$0xff]  ;;  %s1586_s15 = scalar_lea.vmem %s1585_s11, 32768  ;;  %p1587_p12 = scmp.lt.s32.totalorder %s2484_s7, %s1585_s11 }
  0x7d   : > { %v1007_v35 = vadd.f32 %v1913_v17, %v877_v23  ;;  %v1008_v36 = vadd.f32 %v1913_v17, %v878_v24  ;;  %v880_v38 = vadd.f32 %v752_v18, %v624_v26  ;;  %v627_v44 = vadd.f32 %v499_v32, %v307_v28  ;;  %v434_v48 = vld [vmem:[%s1893_s14 + $0x28] sm:$0xff]  ;;  %v757_v52 = vld [vmem:[%s1902_s24 + $0x40] sm:$0xff]  ;;  %v311_v59 = vld [vmem:[%s1885_s5 + $0x50] sm:$0xff]  ;;  %p1583_p6 = pneg %p1582_p9  ;;  %p1588_p0 = scmp.lt.s32.totalorder %s1586_s15, %s1580_s16 }
  0x7e   : > { %v881_v42 = vadd.f32 %v753_v20, %v625_v30  ;;  %v882_v43 = vadd.f32 %v754_v27, %v626_v31  ;;  %v628_v45 = vadd.f32 %v500_v34, %v308_v33  ;;  %v1009_v49 = vadd.f32 %v1913_v17, %v879_v37  ;;  %v758_v54 = vld [vmem:[%s1902_s24 + $0x48] sm:$0xff]  ;;  %v312_v60 = vld [vmem:[%s1885_s5 + $0x58] sm:$0xff]  ;;  %v435_v61 = vld [vmem:[%s1893_s14 + $0x30] sm:$0xff] }
  0x7f   : > { %1135 = vst [vmem:[%s1931_s26] sm:$0xff] %v1007_v35  ;;  %1136 = vst [vmem:[%s1931_s26 + $0x8] sm:$0xff] %v1008_v36  ;;  %v1010_v50 = vadd.f32 %v1913_v17, %v880_v38  ;;  %v501_v51 = vunpack.c.l.bf16 %v433_v41  ;;  %v502_v53 = vunpack.c.h.bf16 %v433_v41  ;;  %v883_v57 = vadd.f32 %v755_v39, %v627_v44  ;;  %v759_v1 = vld [vmem:[%s1902_s24 + $0x50] sm:$0xff]  ;;  %v313_v3 = vld [vmem:[%s1885_s5 + $0x60] sm:$0xff]  ;;  %p1589_p8 = por %p1588_p0, %p1587_p12 }
  0x80   : > { %v1011_v55 = vadd.f32 %v1913_v17, %v881_v42  ;;  %v1012_v56 = vadd.f32 %v1913_v17, %v882_v43  ;;  %v884_v58 = vadd.f32 %v756_v40, %v628_v45  ;;  %1137 = vst [vmem:[%s1931_s26 + $0x10] sm:$0xff] %v1009_v49  ;;  %v503_v0 = vunpack.c.l.bf16 %v434_v48  ;;  %v314_v4 = vld [vmem:[%s1885_s5 + $0x68] sm:$0xff]  ;;  %v760_v7 = vld [vmem:[%s1902_s24 + $0x58] sm:$0xff]  ;;  %v761_v9 = vld [vmem:[%s1902_s24 + $0x60] sm:$0xff] }
  0x81   : > { %1138 = vst [vmem:[%s1931_s26 + $0x18] sm:$0xff] %v1010_v50  ;;  %v629_v62 = vadd.f32 %v501_v51, %v309_v46  ;;  %v630_v63 = vadd.f32 %v502_v53, %v310_v47  ;;  %v504_v2 = vunpack.c.h.bf16 %v434_v48  ;;  %v1013_v5 = vadd.f32 %v1913_v17, %v883_v57  ;;  %v436_v11 = vld [vmem:[%s1893_s14 + $0x38] sm:$0xff]  ;;  %v762_v16 = vld [vmem:[%s1902_s24 + $0x68] sm:$0xff]  ;;  %v315_v18 = vld [vmem:[%s1885_s5 + $0x70] sm:$0xff]  ;;  %p1590_p10 = pnand %p1589_p8, %p1583_p6 }
  0x82   : > { %1139 = vst [vmem:[%s1931_s26 + $0x20] sm:$0xff] %v1011_v55  ;;  %1140 = vst [vmem:[%s1931_s26 + $0x28] sm:$0xff] %v1012_v56  ;;  %v1014_v6 = vadd.f32 %v1913_v17, %v884_v58  ;;  %v505_v8 = vunpack.c.l.bf16 %v435_v61  ;;  %v506_v10 = vunpack.c.h.bf16 %v435_v61  ;;  %v631_v14 = vadd.f32 %v503_v0, %v311_v59  ;;  %v316_v19 = vld [vmem:[%s1885_s5 + $0x78] sm:$0xff]  ;;  %v437_v24 = vld [vmem:[%s1893_s14 + $0x40] sm:$0xff] }
  0x83   : > { %v885_v12 = vadd.f32 %v757_v52, %v629_v62  ;;  %v886_v13 = vadd.f32 %v758_v54, %v630_v63  ;;  %v632_v15 = vadd.f32 %v504_v2, %v312_v60  ;;  %1141 = vst [vmem:[%s1931_s26 + $0x30] sm:$0xff] %v1013_v5  ;;  %v507_v22 = vunpack.c.l.bf16 %v436_v11  ;;  %v763_v29 = vld [vmem:[%s1902_s24 + $0x70] sm:$0xff]  ;;  %v764_v30 = vld [vmem:[%s1902_s24 + $0x78] sm:$0xff]  ;;  %v317_v35 = vld [vmem:[%s1885_s5 + $0x80] sm:$0xff] }
  0x84   : > { %1142 = vst [vmem:[%s1931_s26 + $0x38] sm:$0xff] %v1014_v6  ;;  %v633_v20 = vadd.f32 %v505_v8, %v313_v3  ;;  %v634_v21 = vadd.f32 %v506_v10, %v314_v4  ;;  %v508_v23 = vunpack.c.h.bf16 %v436_v11  ;;  %v887_v27 = vadd.f32 %v759_v1, %v631_v14  ;;  %v318_v36 = vld [vmem:[%s1885_s5 + $0x88] sm:$0xff]  ;;  %v765_v41 = vld [vmem:[%s1902_s24 + $0x80] sm:$0xff]  ;;  %v439_v43 = vld [vmem:[%s1893_s14 + $0x50] sm:$0xff] }
  0x85   : > { %v1015_v25 = vadd.f32 %v1913_v17, %v885_v12  ;;  %v1016_v26 = vadd.f32 %v1913_v17, %v886_v13  ;;  %v888_v28 = vadd.f32 %v760_v7, %v632_v15  ;;  %v635_v33 = vadd.f32 %v507_v22, %v315_v18  ;;  %v438_v37 = vld [vmem:[%s1893_s14 + $0x48] sm:$0xff]  ;;  %v319_v49 = vld [vmem:[%s1885_s5 + $0x90] sm:$0xff]  ;;  %v320_v50 = vld [vmem:[%s1885_s5 + $0x98] sm:$0xff] }
  0x86   : > { %v889_v31 = vadd.f32 %v761_v9, %v633_v20  ;;  %v890_v32 = vadd.f32 %v762_v16, %v634_v21  ;;  %v636_v34 = vadd.f32 %v508_v23, %v316_v19  ;;  %v1017_v38 = vadd.f32 %v1913_v17, %v887_v27  ;;  %v766_v48 = vld [vmem:[%s1902_s24 + $0x88] sm:$0xff]  ;;  %v321_v55 = vld [vmem:[%s1885_s5 + $0xa0] sm:$0xff]  ;;  %v440_v57 = vld [vmem:[%s1893_s14 + $0x58] sm:$0xff] }
  0x87   : > { %1143 = vst [vmem:[%s1931_s26 + $0x40] sm:$0xff] %v1015_v25  ;;  %1144 = vst [vmem:[%s1931_s26 + $0x48] sm:$0xff] %v1016_v26  ;;  %v1018_v39 = vadd.f32 %v1913_v17, %v888_v28  ;;  %v509_v40 = vunpack.c.l.bf16 %v437_v24  ;;  %v510_v42 = vunpack.c.h.bf16 %v437_v24  ;;  %v891_v46 = vadd.f32 %v763_v29, %v635_v33  ;;  %v322_v56 = vld [vmem:[%s1885_s5 + $0xa8] sm:$0xff]  ;;  %v767_v60 = vld [vmem:[%s1902_s24 + $0x90] sm:$0xff] }
  0x88   : > { %v1019_v44 = vadd.f32 %v1913_v17, %v889_v31  ;;  %v1020_v45 = vadd.f32 %v1913_v17, %v890_v32  ;;  %v892_v47 = vadd.f32 %v764_v30, %v636_v34  ;;  %1145 = vst [vmem:[%s1931_s26 + $0x50] sm:$0xff] %v1017_v38  ;;  %v511_v53 = vunpack.c.l.bf16 %v438_v37  ;;  %v768_v61 = vld [vmem:[%s1902_s24 + $0x98] sm:$0xff]  ;;  %v769_v63 = vld [vmem:[%s1902_s24 + $0xa0] sm:$0xff]  ;;  %v770_v5 = vld [vmem:[%s1902_s24 + $0xa8] sm:$0xff] }
  0x89   : > { %1146 = vst [vmem:[%s1931_s26 + $0x58] sm:$0xff] %v1018_v39  ;;  %v637_v51 = vadd.f32 %v509_v40, %v317_v35  ;;  %v638_v52 = vadd.f32 %v510_v42, %v318_v36  ;;  %v512_v54 = vunpack.c.h.bf16 %v438_v37  ;;  %v1021_v58 = vadd.f32 %v1913_v17, %v891_v46  ;;  %v323_v6 = vld [vmem:[%s1885_s5 + $0xb0] sm:$0xff]  ;;  %v324_v7 = vld [vmem:[%s1885_s5 + $0xb8] sm:$0xff]  ;;  %v441_v12 = vld [vmem:[%s1893_s14 + $0x60] sm:$0xff] }
  0x8a   : > { %1147 = vst [vmem:[%s1931_s26 + $0x60] sm:$0xff] %v1019_v44  ;;  %1148 = vst [vmem:[%s1931_s26 + $0x68] sm:$0xff] %v1020_v45  ;;  %v1022_v59 = vadd.f32 %v1913_v17, %v892_v47  ;;  %v513_v62 = vunpack.c.l.bf16 %v439_v43  ;;  %v514_v0 = vunpack.c.h.bf16 %v439_v43  ;;  %v639_v3 = vadd.f32 %v511_v53, %v319_v49  ;;  %v771_v18 = vld [vmem:[%s1902_s24 + $0xb0] sm:$0xff]  ;;  %v772_v19 = vld [vmem:[%s1902_s24 + $0xb8] sm:$0xff] }
  0x8b   : > { %v893_v1 = vadd.f32 %v765_v41, %v637_v51  ;;  %v894_v2 = vadd.f32 %v766_v48, %v638_v52  ;;  %v640_v4 = vadd.f32 %v512_v54, %v320_v50  ;;  %1149 = vst [vmem:[%s1931_s26 + $0x70] sm:$0xff] %v1021_v58  ;;  %v515_v10 = vunpack.c.l.bf16 %v440_v57  ;;  %v325_v24 = vld [vmem:[%s1885_s5 + $0xc0] sm:$0xff]  ;;  %v326_v25 = vld [vmem:[%s1885_s5 + $0xc8] sm:$0xff]  ;;  %v443_v32 = vld [vmem:[%s1893_s14 + $0x70] sm:$0xff] }
  0x8c   : > { %1150 = vst [vmem:[%s1931_s26 + $0x78] sm:$0xff] %v1022_v59  ;;  %v641_v8 = vadd.f32 %v513_v62, %v321_v55  ;;  %v642_v9 = vadd.f32 %v514_v0, %v322_v56  ;;  %v516_v11 = vunpack.c.h.bf16 %v440_v57  ;;  %v895_v15 = vadd.f32 %v767_v60, %v639_v3  ;;  %v442_v26 = vld [vmem:[%s1893_s14 + $0x68] sm:$0xff]  ;;  %v773_v30 = vld [vmem:[%s1902_s24 + $0xc0] sm:$0xff]  ;;  %v327_v38 = vld [vmem:[%s1885_s5 + $0xd0] sm:$0xff] }
  0x8d   : > { %v1023_v13 = vadd.f32 %v1913_v17, %v893_v1  ;;  %v1024_v14 = vadd.f32 %v1913_v17, %v894_v2  ;;  %v896_v16 = vadd.f32 %v768_v61, %v640_v4  ;;  %v643_v22 = vadd.f32 %v515_v10, %v323_v6  ;;  %v774_v37 = vld [vmem:[%s1902_s24 + $0xc8] sm:$0xff]  ;;  %v328_v39 = vld [vmem:[%s1885_s5 + $0xd8] sm:$0xff]  ;;  %v329_v44 = vld [vmem:[%s1885_s5 + $0xe0] sm:$0xff] }
  0x8e   : > { %v897_v20 = vadd.f32 %v769_v63, %v641_v8  ;;  %v898_v21 = vadd.f32 %v770_v5, %v642_v9  ;;  %v644_v23 = vadd.f32 %v516_v11, %v324_v7  ;;  %v1025_v27 = vadd.f32 %v1913_v17, %v895_v15  ;;  %v330_v45 = vld [vmem:[%s1885_s5 + $0xe8] sm:$0xff]  ;;  %v444_v46 = vld [vmem:[%s1893_s14 + $0x78] sm:$0xff]  ;;  %v775_v49 = vld [vmem:[%s1902_s24 + $0xd0] sm:$0xff] }
  0x8f   : > { %1151 = vst [vmem:[%s1931_s26 + $0x80] sm:$0xff] %v1023_v13  ;;  %1152 = vst [vmem:[%s1931_s26 + $0x88] sm:$0xff] %v1024_v14  ;;  %v1026_v28 = vadd.f32 %v1913_v17, %v896_v16  ;;  %v517_v29 = vunpack.c.l.bf16 %v441_v12  ;;  %v518_v31 = vunpack.c.h.bf16 %v441_v12  ;;  %v899_v35 = vadd.f32 %v771_v18, %v643_v22  ;;  %v776_v50 = vld [vmem:[%s1902_s24 + $0xd8] sm:$0xff]  ;;  %v777_v52 = vld [vmem:[%s1902_s24 + $0xe0] sm:$0xff] }
  0x90   : > { %v1027_v33 = vadd.f32 %v1913_v17, %v897_v20  ;;  %v1028_v34 = vadd.f32 %v1913_v17, %v898_v21  ;;  %v900_v36 = vadd.f32 %v772_v19, %v644_v23  ;;  %1153 = vst [vmem:[%s1931_s26 + $0x90] sm:$0xff] %v1025_v27  ;;  %v519_v42 = vunpack.c.l.bf16 %v442_v26  ;;  %v778_v58 = vld [vmem:[%s1902_s24 + $0xe8] sm:$0xff]  ;;  %v331_v59 = vld [vmem:[%s1885_s5 + $0xf0] sm:$0xff]  ;;  %v332_v60 = vld [vmem:[%s1885_s5 + $0xf8] sm:$0xff] }
  0x91   : > { %1154 = vst [vmem:[%s1931_s26 + $0x98] sm:$0xff] %v1026_v28  ;;  %v645_v40 = vadd.f32 %v517_v29, %v325_v24  ;;  %v646_v41 = vadd.f32 %v518_v31, %v326_v25  ;;  %v520_v43 = vunpack.c.h.bf16 %v442_v26  ;;  %v1029_v47 = vadd.f32 %v1913_v17, %v899_v35  ;;  %v445_v1 = vld [vmem:[%s1893_s14 + $0x80] sm:$0xff]  ;;  %v779_v6 = vld [vmem:[%s1902_s24 + $0xf0] sm:$0xff]  ;;  %v780_v7 = vld [vmem:[%s1902_s24 + $0xf8] sm:$0xff] }
  0x92   : > { %1155 = vst [vmem:[%s1931_s26 + $0xa0] sm:$0xff] %v1027_v33  ;;  %1156 = vst [vmem:[%s1931_s26 + $0xa8] sm:$0xff] %v1028_v34  ;;  %v1030_v48 = vadd.f32 %v1913_v17, %v900_v36  ;;  %v521_v51 = vunpack.c.l.bf16 %v443_v32  ;;  %v522_v53 = vunpack.c.h.bf16 %v443_v32  ;;  %v647_v56 = vadd.f32 %v519_v42, %v327_v38  ;;  %v333_v12 = vld [vmem:[%s1885_s5 + $0x100] sm:$0xff]  ;;  %v334_v13 = vld [vmem:[%s1885_s5 + $0x108] sm:$0xff] }
  0x93   : > { %v901_v54 = vadd.f32 %v773_v30, %v645_v40  ;;  %v902_v55 = vadd.f32 %v774_v37, %v646_v41  ;;  %v648_v57 = vadd.f32 %v520_v43, %v328_v39  ;;  %1157 = vst [vmem:[%s1931_s26 + $0xb0] sm:$0xff] %v1029_v47  ;;  %v523_v63 = vunpack.c.l.bf16 %v444_v46  ;;  %v446_v14 = vld [vmem:[%s1893_s14 + $0x88] sm:$0xff]  ;;  %v781_v19 = vld [vmem:[%s1902_s24 + $0x100] sm:$0xff]  ;;  %v447_v21 = vld [vmem:[%s1893_s14 + $0x90] sm:$0xff] }
  0x94   : > { %1158 = vst [vmem:[%s1931_s26 + $0xb8] sm:$0xff] %v1030_v48  ;;  %v649_v61 = vadd.f32 %v521_v51, %v329_v44  ;;  %v650_v62 = vadd.f32 %v522_v53, %v330_v45  ;;  %v524_v0 = vunpack.c.h.bf16 %v444_v46  ;;  %v903_v4 = vadd.f32 %v775_v49, %v647_v56  ;;  %v782_v26 = vld [vmem:[%s1902_s24 + $0x108] sm:$0xff]  ;;  %v335_v27 = vld [vmem:[%s1885_s5 + $0x110] sm:$0xff]  ;;  %v336_v28 = vld [vmem:[%s1885_s5 + $0x118] sm:$0xff] }
  0x95   : > { %v1031_v2 = vadd.f32 %v1913_v17, %v901_v54  ;;  %v1032_v3 = vadd.f32 %v1913_v17, %v902_v55  ;;  %v904_v5 = vadd.f32 %v776_v50, %v648_v57  ;;  %v651_v10 = vadd.f32 %v523_v63, %v331_v59  ;;  %v337_v33 = vld [vmem:[%s1885_s5 + $0x120] sm:$0xff]  ;;  %v338_v34 = vld [vmem:[%s1885_s5 + $0x128] sm:$0xff]  ;;  %v448_v35 = vld [vmem:[%s1893_s14 + $0x98] sm:$0xff] }
  0x96   : > { %v905_v8 = vadd.f32 %v777_v52, %v649_v61  ;;  %v906_v9 = vadd.f32 %v778_v58, %v650_v62  ;;  %v652_v11 = vadd.f32 %v524_v0, %v332_v60  ;;  %v1033_v15 = vadd.f32 %v1913_v17, %v903_v4  ;;  %v783_v38 = vld [vmem:[%s1902_s24 + $0x110] sm:$0xff]  ;;  %v784_v39 = vld [vmem:[%s1902_s24 + $0x118] sm:$0xff]  ;;  %v785_v41 = vld [vmem:[%s1902_s24 + $0x120] sm:$0xff] }
  0x97   : > { %1159 = vst [vmem:[%s1931_s26 + $0xc0] sm:$0xff] %v1031_v2  ;;  %1160 = vst [vmem:[%s1931_s26 + $0xc8] sm:$0xff] %v1032_v3  ;;  %v1034_v16 = vadd.f32 %v1913_v17, %v904_v5  ;;  %v525_v18 = vunpack.c.l.bf16 %v445_v1  ;;  %v526_v20 = vunpack.c.h.bf16 %v445_v1  ;;  %v907_v24 = vadd.f32 %v779_v6, %v651_v10  ;;  %v786_v47 = vld [vmem:[%s1902_s24 + $0x128] sm:$0xff]  ;;  %v339_v48 = vld [vmem:[%s1885_s5 + $0x130] sm:$0xff] }
  0x98   : > { %v1035_v22 = vadd.f32 %v1913_v17, %v905_v8  ;;  %v1036_v23 = vadd.f32 %v1913_v17, %v906_v9  ;;  %v908_v25 = vadd.f32 %v780_v7, %v652_v11  ;;  %1161 = vst [vmem:[%s1931_s26 + $0xd0] sm:$0xff] %v1033_v15  ;;  %v527_v31 = vunpack.c.l.bf16 %v446_v14  ;;  %v340_v49 = vld [vmem:[%s1885_s5 + $0x138] sm:$0xff]  ;;  %v449_v54 = vld [vmem:[%s1893_s14 + $0xa0] sm:$0xff]  ;;  %v787_v59 = vld [vmem:[%s1902_s24 + $0x130] sm:$0xff] }
  0x99   : > { %1162 = vst [vmem:[%s1931_s26 + $0xd8] sm:$0xff] %v1034_v16  ;;  %v653_v29 = vadd.f32 %v525_v18, %v333_v12  ;;  %v654_v30 = vadd.f32 %v526_v20, %v334_v13  ;;  %v528_v32 = vunpack.c.h.bf16 %v446_v14  ;;  %v1037_v36 = vadd.f32 %v1913_v17, %v907_v24  ;;  %v788_v60 = vld [vmem:[%s1902_s24 + $0x138] sm:$0xff]  ;;  %v341_v1 = vld [vmem:[%s1885_s5 + $0x140] sm:$0xff]  ;;  %v342_v2 = vld [vmem:[%s1885_s5 + $0x148] sm:$0xff] }
  0x9a   : > { %1163 = vst [vmem:[%s1931_s26 + $0xe0] sm:$0xff] %v1035_v22  ;;  %1164 = vst [vmem:[%s1931_s26 + $0xe8] sm:$0xff] %v1036_v23  ;;  %v1038_v37 = vadd.f32 %v1913_v17, %v908_v25  ;;  %v529_v40 = vunpack.c.l.bf16 %v447_v21  ;;  %v530_v42 = vunpack.c.h.bf16 %v447_v21  ;;  %v655_v45 = vadd.f32 %v527_v31, %v335_v27  ;;  %v450_v3 = vld [vmem:[%s1893_s14 + $0xa8] sm:$0xff]  ;;  %v789_v7 = vld [vmem:[%s1902_s24 + $0x140] sm:$0xff] }
  0x9b   : > { %v909_v43 = vadd.f32 %v781_v19, %v653_v29  ;;  %v910_v44 = vadd.f32 %v782_v26, %v654_v30  ;;  %v656_v46 = vadd.f32 %v528_v32, %v336_v28  ;;  %1165 = vst [vmem:[%s1931_s26 + $0xf0] sm:$0xff] %v1037_v36  ;;  %v531_v52 = vunpack.c.l.bf16 %v448_v35  ;;  %v451_v9 = vld [vmem:[%s1893_s14 + $0xb0] sm:$0xff]  ;;  %v790_v14 = vld [vmem:[%s1902_s24 + $0x148] sm:$0xff]  ;;  %v344_v16 = vld [vmem:[%s1885_s5 + $0x158] sm:$0xff] }
  0x9c   : > { %1166 = vst [vmem:[%s1931_s26 + $0xf8] sm:$0xff] %v1038_v37  ;;  %v657_v50 = vadd.f32 %v529_v40, %v337_v33  ;;  %v658_v51 = vadd.f32 %v530_v42, %v338_v34  ;;  %v532_v53 = vunpack.c.h.bf16 %v448_v35  ;;  %v911_v57 = vadd.f32 %v783_v38, %v655_v45  ;;  %v343_v15 = vld [vmem:[%s1885_s5 + $0x150] sm:$0xff]  ;;  %v345_v22 = vld [vmem:[%s1885_s5 + $0x160] sm:$0xff]  ;;  %v346_v23 = vld [vmem:[%s1885_s5 + $0x168] sm:$0xff] }
  0x9d   : > { %v1039_v55 = vadd.f32 %v1913_v17, %v909_v43  ;;  %v1040_v56 = vadd.f32 %v1913_v17, %v910_v44  ;;  %v912_v58 = vadd.f32 %v784_v39, %v656_v46  ;;  %v659_v63 = vadd.f32 %v531_v52, %v339_v48  ;;  %v452_v24 = vld [vmem:[%s1893_s14 + $0xb8] sm:$0xff]  ;;  %v791_v27 = vld [vmem:[%s1902_s24 + $0x150] sm:$0xff]  ;;  %v793_v30 = vld [vmem:[%s1902_s24 + $0x160] sm:$0xff] }
  0x9e   : > { %v913_v61 = vadd.f32 %v785_v41, %v657_v50  ;;  %v914_v62 = vadd.f32 %v786_v47, %v658_v51  ;;  %v660_v0 = vadd.f32 %v532_v53, %v340_v49  ;;  %v1041_v4 = vadd.f32 %v1913_v17, %v911_v57  ;;  %v792_v28 = vld [vmem:[%s1902_s24 + $0x158] sm:$0xff]  ;;  %v794_v36 = vld [vmem:[%s1902_s24 + $0x168] sm:$0xff]  ;;  %v347_v37 = vld [vmem:[%s1885_s5 + $0x170] sm:$0xff] }
  0x9f   : > { %1167 = vst [vmem:[%s1931_s26 + $0x100] sm:$0xff] %v1039_v55  ;;  %1168 = vst [vmem:[%s1931_s26 + $0x108] sm:$0xff] %v1040_v56  ;;  %v1042_v5 = vadd.f32 %v1913_v17, %v912_v58  ;;  %v533_v6 = vunpack.c.l.bf16 %v449_v54  ;;  %v534_v8 = vunpack.c.h.bf16 %v449_v54  ;;  %v915_v12 = vadd.f32 %v787_v59, %v659_v63  ;;  %v348_v38 = vld [vmem:[%s1885_s5 + $0x178] sm:$0xff]  ;;  %v453_v43 = vld [vmem:[%s1893_s14 + $0xc0] sm:$0xff] }
  0xa0   : > { %v1043_v10 = vadd.f32 %v1913_v17, %v913_v61  ;;  %v1044_v11 = vadd.f32 %v1913_v17, %v914_v62  ;;  %v916_v13 = vadd.f32 %v788_v60, %v660_v0  ;;  %1169 = vst [vmem:[%s1931_s26 + $0x110] sm:$0xff] %v1041_v4  ;;  %v535_v20 = vunpack.c.l.bf16 %v450_v3  ;;  %v795_v48 = vld [vmem:[%s1902_s24 + $0x170] sm:$0xff]  ;;  %v796_v49 = vld [vmem:[%s1902_s24 + $0x178] sm:$0xff]  ;;  %v349_v54 = vld [vmem:[%s1885_s5 + $0x180] sm:$0xff] }
  0xa1   : > { %1170 = vst [vmem:[%s1931_s26 + $0x118] sm:$0xff] %v1042_v5  ;;  %v661_v18 = vadd.f32 %v533_v6, %v341_v1  ;;  %v662_v19 = vadd.f32 %v534_v8, %v342_v2  ;;  %v536_v21 = vunpack.c.h.bf16 %v450_v3  ;;  %v1045_v25 = vadd.f32 %v1913_v17, %v915_v12  ;;  %v350_v55 = vld [vmem:[%s1885_s5 + $0x188] sm:$0xff]  ;;  %v797_v60 = vld [vmem:[%s1902_s24 + $0x180] sm:$0xff]  ;;  %v455_v62 = vld [vmem:[%s1893_s14 + $0xd0] sm:$0xff] }
  0xa2   : > { %1171 = vst [vmem:[%s1931_s26 + $0x120] sm:$0xff] %v1043_v10  ;;  %1172 = vst [vmem:[%s1931_s26 + $0x128] sm:$0xff] %v1044_v11  ;;  %v1046_v26 = vadd.f32 %v1913_v17, %v916_v13  ;;  %v537_v29 = vunpack.c.l.bf16 %v451_v9  ;;  %v538_v31 = vunpack.c.h.bf16 %v451_v9  ;;  %v663_v34 = vadd.f32 %v535_v20, %v343_v15  ;;  %v454_v56 = vld [vmem:[%s1893_s14 + $0xc8] sm:$0xff]  ;;  %v351_v4 = vld [vmem:[%s1885_s5 + $0x190] sm:$0xff] }
  0xa3   : > { %v917_v32 = vadd.f32 %v789_v7, %v661_v18  ;;  %v918_v33 = vadd.f32 %v790_v14, %v662_v19  ;;  %v664_v35 = vadd.f32 %v536_v21, %v344_v16  ;;  %1173 = vst [vmem:[%s1931_s26 + $0x130] sm:$0xff] %v1045_v25  ;;  %v539_v41 = vunpack.c.l.bf16 %v452_v24  ;;  %v798_v3 = vld [vmem:[%s1902_s24 + $0x188] sm:$0xff]  ;;  %v352_v5 = vld [vmem:[%s1885_s5 + $0x198] sm:$0xff]  ;;  %v353_v10 = vld [vmem:[%s1885_s5 + $0x1a0] sm:$0xff] }
  0xa4   : > { %1174 = vst [vmem:[%s1931_s26 + $0x138] sm:$0xff] %v1046_v26  ;;  %v665_v39 = vadd.f32 %v537_v29, %v345_v22  ;;  %v666_v40 = vadd.f32 %v538_v31, %v346_v23  ;;  %v540_v42 = vunpack.c.h.bf16 %v452_v24  ;;  %v919_v46 = vadd.f32 %v791_v27, %v663_v34  ;;  %v354_v11 = vld [vmem:[%s1885_s5 + $0x1a8] sm:$0xff]  ;;  %v456_v12 = vld [vmem:[%s1893_s14 + $0xd8] sm:$0xff]  ;;  %v799_v15 = vld [vmem:[%s1902_s24 + $0x190] sm:$0xff] }
  0xa5   : > { %v1047_v44 = vadd.f32 %v1913_v17, %v917_v32  ;;  %v1048_v45 = vadd.f32 %v1913_v17, %v918_v33  ;;  %v920_v47 = vadd.f32 %v792_v28, %v664_v35  ;;  %v667_v52 = vadd.f32 %v539_v41, %v347_v37  ;;  %v800_v16 = vld [vmem:[%s1902_s24 + $0x198] sm:$0xff]  ;;  %v801_v19 = vld [vmem:[%s1902_s24 + $0x1a0] sm:$0xff]  ;;  %v802_v25 = vld [vmem:[%s1902_s24 + $0x1a8] sm:$0xff] }
  0xa6   : > { %v921_v50 = vadd.f32 %v793_v30, %v665_v39  ;;  %v922_v51 = vadd.f32 %v794_v36, %v666_v40  ;;  %v668_v53 = vadd.f32 %v540_v42, %v348_v38  ;;  %v1049_v57 = vadd.f32 %v1913_v17, %v919_v46  ;;  %v355_v26 = vld [vmem:[%s1885_s5 + $0x1b0] sm:$0xff]  ;;  %v356_v27 = vld [vmem:[%s1885_s5 + $0x1b8] sm:$0xff]  ;;  %v457_v32 = vld [vmem:[%s1893_s14 + $0xe0] sm:$0xff] }
  0xa7   : > { %1175 = vst [vmem:[%s1931_s26 + $0x140] sm:$0xff] %v1047_v44  ;;  %1176 = vst [vmem:[%s1931_s26 + $0x148] sm:$0xff] %v1048_v45  ;;  %v1050_v58 = vadd.f32 %v1913_v17, %v920_v47  ;;  %v541_v59 = vunpack.c.l.bf16 %v453_v43  ;;  %v542_v61 = vunpack.c.h.bf16 %v453_v43  ;;  %v923_v1 = vadd.f32 %v795_v48, %v667_v52  ;;  %v803_v37 = vld [vmem:[%s1902_s24 + $0x1b0] sm:$0xff]  ;;  %v804_v38 = vld [vmem:[%s1902_s24 + $0x1b8] sm:$0xff] }
  0xa8   : > { %v1051_v63 = vadd.f32 %v1913_v17, %v921_v50  ;;  %v1052_v0 = vadd.f32 %v1913_v17, %v922_v51  ;;  %v924_v2 = vadd.f32 %v796_v49, %v668_v53  ;;  %1177 = vst [vmem:[%s1931_s26 + $0x150] sm:$0xff] %v1049_v57  ;;  %v543_v8 = vunpack.c.l.bf16 %v454_v56  ;;  %v357_v43 = vld [vmem:[%s1885_s5 + $0x1c0] sm:$0xff]  ;;  %v358_v44 = vld [vmem:[%s1885_s5 + $0x1c8] sm:$0xff]  ;;  %v459_v51 = vld [vmem:[%s1893_s14 + $0xf0] sm:$0xff] }
  0xa9   : > { %1178 = vst [vmem:[%s1931_s26 + $0x158] sm:$0xff] %v1050_v58  ;;  %v669_v6 = vadd.f32 %v541_v59, %v349_v54  ;;  %v670_v7 = vadd.f32 %v542_v61, %v350_v55  ;;  %v544_v9 = vunpack.c.h.bf16 %v454_v56  ;;  %v1053_v13 = vadd.f32 %v1913_v17, %v923_v1  ;;  %v458_v45 = vld [vmem:[%s1893_s14 + $0xe8] sm:$0xff]  ;;  %v805_v49 = vld [vmem:[%s1902_s24 + $0x1c0] sm:$0xff]  ;;  %v359_v57 = vld [vmem:[%s1885_s5 + $0x1d0] sm:$0xff] }
  0xaa   : > { %1179 = vst [vmem:[%s1931_s26 + $0x160] sm:$0xff] %v1051_v63  ;;  %1180 = vst [vmem:[%s1931_s26 + $0x168] sm:$0xff] %v1052_v0  ;;  %v1054_v14 = vadd.f32 %v1913_v17, %v924_v2  ;;  %v545_v18 = vunpack.c.l.bf16 %v455_v62  ;;  %v546_v20 = vunpack.c.h.bf16 %v455_v62  ;;  %v671_v23 = vadd.f32 %v543_v8, %v351_v4  ;;  %v806_v56 = vld [vmem:[%s1902_s24 + $0x1c8] sm:$0xff]  ;;  %v360_v58 = vld [vmem:[%s1885_s5 + $0x1d8] sm:$0xff] }
  0xab   : > { %v925_v21 = vadd.f32 %v797_v60, %v669_v6  ;;  %v926_v22 = vadd.f32 %v798_v3, %v670_v7  ;;  %v672_v24 = vadd.f32 %v544_v9, %v352_v5  ;;  %1181 = vst [vmem:[%s1931_s26 + $0x170] sm:$0xff] %v1053_v13  ;;  %v547_v30 = vunpack.c.l.bf16 %v456_v12  ;;  %v361_v63 = vld [vmem:[%s1885_s5 + $0x1e0] sm:$0xff]  ;;  %v362_v0 = vld [vmem:[%s1885_s5 + $0x1e8] sm:$0xff]  ;;  %v460_v1 = vld [vmem:[%s1893_s14 + $0xf8] sm:$0xff] }
  0xac   : > { %1182 = vst [vmem:[%s1931_s26 + $0x178] sm:$0xff] %v1054_v14  ;;  %v673_v28 = vadd.f32 %v545_v18, %v353_v10  ;;  %v674_v29 = vadd.f32 %v546_v20, %v354_v11  ;;  %v548_v31 = vunpack.c.h.bf16 %v456_v12  ;;  %v927_v35 = vadd.f32 %v799_v15, %v671_v23  ;;  %v807_v4 = vld [vmem:[%s1902_s24 + $0x1d0] sm:$0xff]  ;;  %v808_v5 = vld [vmem:[%s1902_s24 + $0x1d8] sm:$0xff]  ;;  %v809_v7 = vld [vmem:[%s1902_s24 + $0x1e0] sm:$0xff] }
  0xad   : > { %v1055_v33 = vadd.f32 %v1913_v17, %v925_v21  ;;  %v1056_v34 = vadd.f32 %v1913_v17, %v926_v22  ;;  %v928_v36 = vadd.f32 %v800_v16, %v672_v24  ;;  %v675_v41 = vadd.f32 %v547_v30, %v355_v26  ;;  %v810_v13 = vld [vmem:[%s1902_s24 + $0x1e8] sm:$0xff]  ;;  %v363_v14 = vld [vmem:[%s1885_s5 + $0x1f0] sm:$0xff]  ;;  %v364_v15 = vld [vmem:[%s1885_s5 + $0x1f8] sm:$0xff] }
  0xae   : > { %v929_v39 = vadd.f32 %v801_v19, %v673_v28  ;;  %v930_v40 = vadd.f32 %v802_v25, %v674_v29  ;;  %v676_v42 = vadd.f32 %v548_v31, %v356_v27  ;;  %v1057_v46 = vadd.f32 %v1913_v17, %v927_v35  ;;  %v461_v21 = vld [vmem:[%s1893_s14 + $0x100] sm:$0xff]  ;;  %v811_v26 = vld [vmem:[%s1902_s24 + $0x1f0] sm:$0xff]  ;;  %v812_v27 = vld [vmem:[%s1902_s24 + $0x1f8] sm:$0xff] }
  0xaf   : > { %1183 = vst [vmem:[%s1931_s26 + $0x180] sm:$0xff] %v1055_v33  ;;  %1184 = vst [vmem:[%s1931_s26 + $0x188] sm:$0xff] %v1056_v34  ;;  %v1058_v47 = vadd.f32 %v1913_v17, %v928_v36  ;;  %v549_v48 = vunpack.c.l.bf16 %v457_v32  ;;  %v550_v50 = vunpack.c.h.bf16 %v457_v32  ;;  %v931_v54 = vadd.f32 %v803_v37, %v675_v41  ;;  %v365_v32 = vld [vmem:[%s1885_s5 + $0x200] sm:$0xff]  ;;  %v366_v33 = vld [vmem:[%s1885_s5 + $0x208] sm:$0xff] }
  0xb0   : > { %v1059_v52 = vadd.f32 %v1913_v17, %v929_v39  ;;  %v1060_v53 = vadd.f32 %v1913_v17, %v930_v40  ;;  %v932_v55 = vadd.f32 %v804_v38, %v676_v42  ;;  %1185 = vst [vmem:[%s1931_s26 + $0x190] sm:$0xff] %v1057_v46  ;;  %v551_v61 = vunpack.c.l.bf16 %v458_v45  ;;  %v462_v34 = vld [vmem:[%s1893_s14 + $0x108] sm:$0xff]  ;;  %v813_v38 = vld [vmem:[%s1902_s24 + $0x200] sm:$0xff]  ;;  %v463_v40 = vld [vmem:[%s1893_s14 + $0x110] sm:$0xff] }
  0xb1   : > { %1186 = vst [vmem:[%s1931_s26 + $0x198] sm:$0xff] %v1058_v47  ;;  %v677_v59 = vadd.f32 %v549_v48, %v357_v43  ;;  %v678_v60 = vadd.f32 %v550_v50, %v358_v44  ;;  %v552_v62 = vunpack.c.h.bf16 %v458_v45  ;;  %v1061_v2 = vadd.f32 %v1913_v17, %v931_v54  ;;  %v814_v45 = vld [vmem:[%s1902_s24 + $0x208] sm:$0xff]  ;;  %v367_v46 = vld [vmem:[%s1885_s5 + $0x210] sm:$0xff]  ;;  %v368_v47 = vld [vmem:[%s1885_s5 + $0x218] sm:$0xff] }
  0xb2   : > { %1187 = vst [vmem:[%s1931_s26 + $0x1a0] sm:$0xff] %v1059_v52  ;;  %1188 = vst [vmem:[%s1931_s26 + $0x1a8] sm:$0xff] %v1060_v53  ;;  %v1062_v3 = vadd.f32 %v1913_v17, %v932_v55  ;;  %v553_v6 = vunpack.c.l.bf16 %v459_v51  ;;  %v554_v8 = vunpack.c.h.bf16 %v459_v51  ;;  %v679_v11 = vadd.f32 %v551_v61, %v359_v57  ;;  %v369_v52 = vld [vmem:[%s1885_s5 + $0x220] sm:$0xff]  ;;  %v370_v53 = vld [vmem:[%s1885_s5 + $0x228] sm:$0xff] }
  0xb3   : > { %v933_v9 = vadd.f32 %v805_v49, %v677_v59  ;;  %v934_v10 = vadd.f32 %v806_v56, %v678_v60  ;;  %v680_v12 = vadd.f32 %v552_v62, %v360_v58  ;;  %1189 = vst [vmem:[%s1931_s26 + $0x1b0] sm:$0xff] %v1061_v2  ;;  %v555_v19 = vunpack.c.l.bf16 %v460_v1  ;;  %v464_v54 = vld [vmem:[%s1893_s14 + $0x118] sm:$0xff]  ;;  %v815_v57 = vld [vmem:[%s1902_s24 + $0x210] sm:$0xff]  ;;  %v817_v60 = vld [vmem:[%s1902_s24 + $0x220] sm:$0xff] }
  0xb4   : > { %1190 = vst [vmem:[%s1931_s26 + $0x1b8] sm:$0xff] %v1062_v3  ;;  %v681_v16 = vadd.f32 %v553_v6, %v361_v63  ;;  %v682_v18 = vadd.f32 %v554_v8, %v362_v0  ;;  %v556_v20 = vunpack.c.h.bf16 %v460_v1  ;;  %v935_v24 = vadd.f32 %v807_v4, %v679_v11  ;;  %v816_v58 = vld [vmem:[%s1902_s24 + $0x218] sm:$0xff]  ;;  %v818_v2 = vld [vmem:[%s1902_s24 + $0x228] sm:$0xff]  ;;  %v371_v3 = vld [vmem:[%s1885_s5 + $0x230] sm:$0xff] }
  0xb5   : > { %v1063_v22 = vadd.f32 %v1913_v17, %v933_v9  ;;  %v1064_v23 = vadd.f32 %v1913_v17, %v934_v10  ;;  %v936_v25 = vadd.f32 %v808_v5, %v680_v12  ;;  %v683_v30 = vadd.f32 %v555_v19, %v363_v14  ;;  %v372_v4 = vld [vmem:[%s1885_s5 + $0x238] sm:$0xff]  ;;  %v465_v9 = vld [vmem:[%s1893_s14 + $0x120] sm:$0xff]  ;;  %v819_v14 = vld [vmem:[%s1902_s24 + $0x230] sm:$0xff] }
  0xb6   : > { %v937_v28 = vadd.f32 %v809_v7, %v681_v16  ;;  %v938_v29 = vadd.f32 %v810_v13, %v682_v18  ;;  %v684_v31 = vadd.f32 %v556_v20, %v364_v15  ;;  %v1065_v35 = vadd.f32 %v1913_v17, %v935_v24  ;;  %v820_v15 = vld [vmem:[%s1902_s24 + $0x238] sm:$0xff] }
  0xb7   : > { %1191 = vst [vmem:[%s1931_s26 + $0x1c0] sm:$0xff] %v1063_v22  ;;  %1192 = vst [vmem:[%s1931_s26 + $0x1c8] sm:$0xff] %v1064_v23  ;;  %v1066_v36 = vadd.f32 %v1913_v17, %v936_v25  ;;  %v557_v37 = vunpack.c.l.bf16 %v461_v21  ;;  %v558_v39 = vunpack.c.h.bf16 %v461_v21  ;;  %v939_v43 = vadd.f32 %v811_v26, %v683_v30  ;;  %v373_v21 = vld [vmem:[%s1885_s5 + $0x240] sm:$0xff]  ;;  %v374_v22 = vld [vmem:[%s1885_s5 + $0x248] sm:$0xff] }
  0xb8   : > { %v1067_v41 = vadd.f32 %v1913_v17, %v937_v28  ;;  %v1068_v42 = vadd.f32 %v1913_v17, %v938_v29  ;;  %v940_v44 = vadd.f32 %v812_v27, %v684_v31  ;;  %1193 = vst [vmem:[%s1931_s26 + $0x1d0] sm:$0xff] %v1065_v35  ;;  %v559_v50 = vunpack.c.l.bf16 %v462_v34  ;;  %v466_v23 = vld [vmem:[%s1893_s14 + $0x128] sm:$0xff]  ;;  %v821_v27 = vld [vmem:[%s1902_s24 + $0x240] sm:$0xff]  ;;  %v467_v29 = vld [vmem:[%s1893_s14 + $0x130] sm:$0xff] }
  0xb9   : > { %1194 = vst [vmem:[%s1931_s26 + $0x1d8] sm:$0xff] %v1066_v36  ;;  %v685_v48 = vadd.f32 %v557_v37, %v365_v32  ;;  %v686_v49 = vadd.f32 %v558_v39, %v366_v33  ;;  %v560_v51 = vunpack.c.h.bf16 %v462_v34  ;;  %v1069_v55 = vadd.f32 %v1913_v17, %v939_v43  ;;  %v822_v34 = vld [vmem:[%s1902_s24 + $0x248] sm:$0xff]  ;;  %v375_v35 = vld [vmem:[%s1885_s5 + $0x250] sm:$0xff]  ;;  %v376_v36 = vld [vmem:[%s1885_s5 + $0x258] sm:$0xff] }
  0xba   : > { %1195 = vst [vmem:[%s1931_s26 + $0x1e0] sm:$0xff] %v1067_v41  ;;  %1196 = vst [vmem:[%s1931_s26 + $0x1e8] sm:$0xff] %v1068_v42  ;;  %v1070_v56 = vadd.f32 %v1913_v17, %v940_v44  ;;  %v561_v59 = vunpack.c.l.bf16 %v463_v40  ;;  %v562_v61 = vunpack.c.h.bf16 %v463_v40  ;;  %v687_v0 = vadd.f32 %v559_v50, %v367_v46  ;;  %v377_v41 = vld [vmem:[%s1885_s5 + $0x260] sm:$0xff]  ;;  %v378_v42 = vld [vmem:[%s1885_s5 + $0x268] sm:$0xff] }
  0xbb   : > { %v941_v62 = vadd.f32 %v813_v38, %v685_v48  ;;  %v942_v63 = vadd.f32 %v814_v45, %v686_v49  ;;  %v688_v1 = vadd.f32 %v560_v51, %v368_v47  ;;  %1197 = vst [vmem:[%s1931_s26 + $0x1f0] sm:$0xff] %v1069_v55  ;;  %v563_v7 = vunpack.c.l.bf16 %v464_v54  ;;  %v468_v43 = vld [vmem:[%s1893_s14 + $0x138] sm:$0xff]  ;;  %v823_v46 = vld [vmem:[%s1902_s24 + $0x250] sm:$0xff]  ;;  %v825_v49 = vld [vmem:[%s1902_s24 + $0x260] sm:$0xff] }
  0xbc   : > { %1198 = vst [vmem:[%s1931_s26 + $0x1f8] sm:$0xff] %v1070_v56  ;;  %v689_v5 = vadd.f32 %v561_v59, %v369_v52  ;;  %v690_v6 = vadd.f32 %v562_v61, %v370_v53  ;;  %v564_v8 = vunpack.c.h.bf16 %v464_v54  ;;  %v943_v12 = vadd.f32 %v815_v57, %v687_v0  ;;  %v824_v47 = vld [vmem:[%s1902_s24 + $0x258] sm:$0xff]  ;;  %v826_v55 = vld [vmem:[%s1902_s24 + $0x268] sm:$0xff]  ;;  %v379_v56 = vld [vmem:[%s1885_s5 + $0x270] sm:$0xff] }
  0xbd   : > { %v1071_v10 = vadd.f32 %v1913_v17, %v941_v62  ;;  %v1072_v11 = vadd.f32 %v1913_v17, %v942_v63  ;;  %v944_v13 = vadd.f32 %v816_v58, %v688_v1  ;;  %v691_v19 = vadd.f32 %v563_v7, %v371_v3  ;;  %v380_v57 = vld [vmem:[%s1885_s5 + $0x278] sm:$0xff]  ;;  %v469_v62 = vld [vmem:[%s1893_s14 + $0x140] sm:$0xff]  ;;  %v827_v3 = vld [vmem:[%s1902_s24 + $0x270] sm:$0xff] }
  0xbe   : > { %v945_v16 = vadd.f32 %v817_v60, %v689_v5  ;;  %v946_v18 = vadd.f32 %v818_v2, %v690_v6  ;;  %v692_v20 = vadd.f32 %v564_v8, %v372_v4  ;;  %v1073_v24 = vadd.f32 %v1913_v17, %v943_v12  ;;  %v828_v4 = vld [vmem:[%s1902_s24 + $0x278] sm:$0xff] }
  0xbf   : > { %1199 = vst [vmem:[%s1931_s26 + $0x200] sm:$0xff] %v1071_v10  ;;  %1200 = vst [vmem:[%s1931_s26 + $0x208] sm:$0xff] %v1072_v11  ;;  %v1074_v25 = vadd.f32 %v1913_v17, %v944_v13  ;;  %v565_v26 = vunpack.c.l.bf16 %v465_v9  ;;  %v566_v28 = vunpack.c.h.bf16 %v465_v9  ;;  %v947_v32 = vadd.f32 %v819_v14, %v691_v19  ;;  %v381_v9 = vld [vmem:[%s1885_s5 + $0x280] sm:$0xff]  ;;  %v382_v10 = vld [vmem:[%s1885_s5 + $0x288] sm:$0xff] }
  0xc0   : > { %v1075_v30 = vadd.f32 %v1913_v17, %v945_v16  ;;  %v1076_v31 = vadd.f32 %v1913_v17, %v946_v18  ;;  %v948_v33 = vadd.f32 %v820_v15, %v692_v20  ;;  %1201 = vst [vmem:[%s1931_s26 + $0x210] sm:$0xff] %v1073_v24  ;;  %v567_v39 = vunpack.c.l.bf16 %v466_v23  ;;  %v470_v11 = vld [vmem:[%s1893_s14 + $0x148] sm:$0xff]  ;;  %v829_v15 = vld [vmem:[%s1902_s24 + $0x280] sm:$0xff]  ;;  %v471_v18 = vld [vmem:[%s1893_s14 + $0x150] sm:$0xff] }
  0xc1   : > { %1202 = vst [vmem:[%s1931_s26 + $0x218] sm:$0xff] %v1074_v25  ;;  %v693_v37 = vadd.f32 %v565_v26, %v373_v21  ;;  %v694_v38 = vadd.f32 %v566_v28, %v374_v22  ;;  %v568_v40 = vunpack.c.h.bf16 %v466_v23  ;;  %v1077_v44 = vadd.f32 %v1913_v17, %v947_v32  ;;  %v830_v23 = vld [vmem:[%s1902_s24 + $0x288] sm:$0xff]  ;;  %v383_v24 = vld [vmem:[%s1885_s5 + $0x290] sm:$0xff]  ;;  %v384_v25 = vld [vmem:[%s1885_s5 + $0x298] sm:$0xff] }
  0xc2   : > { %1203 = vst [vmem:[%s1931_s26 + $0x220] sm:$0xff] %v1075_v30  ;;  %1204 = vst [vmem:[%s1931_s26 + $0x228] sm:$0xff] %v1076_v31  ;;  %v1078_v45 = vadd.f32 %v1913_v17, %v948_v33  ;;  %v569_v48 = vunpack.c.l.bf16 %v467_v29  ;;  %v570_v50 = vunpack.c.h.bf16 %v467_v29  ;;  %v695_v53 = vadd.f32 %v567_v39, %v375_v35  ;;  %v385_v30 = vld [vmem:[%s1885_s5 + $0x2a0] sm:$0xff]  ;;  %v386_v31 = vld [vmem:[%s1885_s5 + $0x2a8] sm:$0xff] }
  0xc3   : > { %v949_v51 = vadd.f32 %v821_v27, %v693_v37  ;;  %v950_v52 = vadd.f32 %v822_v34, %v694_v38  ;;  %v696_v54 = vadd.f32 %v568_v40, %v376_v36  ;;  %1205 = vst [vmem:[%s1931_s26 + $0x230] sm:$0xff] %v1077_v44  ;;  %v571_v60 = vunpack.c.l.bf16 %v468_v43  ;;  %v472_v32 = vld [vmem:[%s1893_s14 + $0x158] sm:$0xff]  ;;  %v831_v35 = vld [vmem:[%s1902_s24 + $0x290] sm:$0xff]  ;;  %v833_v38 = vld [vmem:[%s1902_s24 + $0x2a0] sm:$0xff] }
  0xc4   : > { %1206 = vst [vmem:[%s1931_s26 + $0x238] sm:$0xff] %v1078_v45  ;;  %v697_v58 = vadd.f32 %v569_v48, %v377_v41  ;;  %v698_v59 = vadd.f32 %v570_v50, %v378_v42  ;;  %v572_v61 = vunpack.c.h.bf16 %v468_v43  ;;  %v951_v1 = vadd.f32 %v823_v46, %v695_v53  ;;  %v832_v36 = vld [vmem:[%s1902_s24 + $0x298] sm:$0xff]  ;;  %v834_v44 = vld [vmem:[%s1902_s24 + $0x2a8] sm:$0xff]  ;;  %v387_v45 = vld [vmem:[%s1885_s5 + $0x2b0] sm:$0xff] }
  0xc5   : > { %v1079_v63 = vadd.f32 %v1913_v17, %v949_v51  ;;  %v1080_v0 = vadd.f32 %v1913_v17, %v950_v52  ;;  %v952_v2 = vadd.f32 %v824_v47, %v696_v54  ;;  %v699_v7 = vadd.f32 %v571_v60, %v379_v56  ;;  %v388_v46 = vld [vmem:[%s1885_s5 + $0x2b8] sm:$0xff]  ;;  %v473_v51 = vld [vmem:[%s1893_s14 + $0x160] sm:$0xff]  ;;  %v835_v56 = vld [vmem:[%s1902_s24 + $0x2b0] sm:$0xff] }
  0xc6   : > { %v953_v5 = vadd.f32 %v825_v49, %v697_v58  ;;  %v954_v6 = vadd.f32 %v826_v55, %v698_v59  ;;  %v700_v8 = vadd.f32 %v572_v61, %v380_v57  ;;  %v1081_v12 = vadd.f32 %v1913_v17, %v951_v1  ;;  %v836_v57 = vld [vmem:[%s1902_s24 + $0x2b8] sm:$0xff] }
  0xc7   : > { %1207 = vst [vmem:[%s1931_s26 + $0x240] sm:$0xff] %v1079_v63  ;;  %1208 = vst [vmem:[%s1931_s26 + $0x248] sm:$0xff] %v1080_v0  ;;  %v1082_v13 = vadd.f32 %v1913_v17, %v952_v2  ;;  %v573_v14 = vunpack.c.l.bf16 %v469_v62  ;;  %v574_v16 = vunpack.c.h.bf16 %v469_v62  ;;  %v955_v21 = vadd.f32 %v827_v3, %v699_v7  ;;  %v389_v62 = vld [vmem:[%s1885_s5 + $0x2c0] sm:$0xff]  ;;  %v390_v63 = vld [vmem:[%s1885_s5 + $0x2c8] sm:$0xff] }
  0xc8   : > { %v1083_v19 = vadd.f32 %v1913_v17, %v953_v5  ;;  %v1084_v20 = vadd.f32 %v1913_v17, %v954_v6  ;;  %v956_v22 = vadd.f32 %v828_v4, %v700_v8  ;;  %1209 = vst [vmem:[%s1931_s26 + $0x250] sm:$0xff] %v1081_v12  ;;  %v575_v28 = vunpack.c.l.bf16 %v470_v11  ;;  %v474_v0 = vld [vmem:[%s1893_s14 + $0x168] sm:$0xff]  ;;  %v837_v4 = vld [vmem:[%s1902_s24 + $0x2c0] sm:$0xff]  ;;  %v475_v6 = vld [vmem:[%s1893_s14 + $0x170] sm:$0xff] }
  0xc9   : > { %1210 = vst [vmem:[%s1931_s26 + $0x258] sm:$0xff] %v1082_v13  ;;  %v701_v26 = vadd.f32 %v573_v14, %v381_v9  ;;  %v702_v27 = vadd.f32 %v574_v16, %v382_v10  ;;  %v576_v29 = vunpack.c.h.bf16 %v470_v11  ;;  %v1085_v33 = vadd.f32 %v1913_v17, %v955_v21  ;;  %v838_v11 = vld [vmem:[%s1902_s24 + $0x2c8] sm:$0xff]  ;;  %v391_v12 = vld [vmem:[%s1885_s5 + $0x2d0] sm:$0xff]  ;;  %v392_v13 = vld [vmem:[%s1885_s5 + $0x2d8] sm:$0xff] }
  0xca   : > { %1211 = vst [vmem:[%s1931_s26 + $0x260] sm:$0xff] %v1083_v19  ;;  %1212 = vst [vmem:[%s1931_s26 + $0x268] sm:$0xff] %v1084_v20  ;;  %v1086_v34 = vadd.f32 %v1913_v17, %v956_v22  ;;  %v577_v37 = vunpack.c.l.bf16 %v471_v18  ;;  %v578_v39 = vunpack.c.h.bf16 %v471_v18  ;;  %v703_v42 = vadd.f32 %v575_v28, %v383_v24  ;;  %v393_v19 = vld [vmem:[%s1885_s5 + $0x2e0] sm:$0xff]  ;;  %v394_v20 = vld [vmem:[%s1885_s5 + $0x2e8] sm:$0xff] }
  0xcb   : > { %v957_v40 = vadd.f32 %v829_v15, %v701_v26  ;;  %v958_v41 = vadd.f32 %v830_v23, %v702_v27  ;;  %v704_v43 = vadd.f32 %v576_v29, %v384_v25  ;;  %1213 = vst [vmem:[%s1931_s26 + $0x270] sm:$0xff] %v1085_v33  ;;  %v579_v49 = vunpack.c.l.bf16 %v472_v32  ;;  %v476_v21 = vld [vmem:[%s1893_s14 + $0x178] sm:$0xff]  ;;  %v839_v24 = vld [vmem:[%s1902_s24 + $0x2d0] sm:$0xff]  ;;  %v841_v27 = vld [vmem:[%s1902_s24 + $0x2e0] sm:$0xff] }
  0xcc   : > { %1214 = vst [vmem:[%s1931_s26 + $0x278] sm:$0xff] %v1086_v34  ;;  %v705_v47 = vadd.f32 %v577_v37, %v385_v30  ;;  %v706_v48 = vadd.f32 %v578_v39, %v386_v31  ;;  %v580_v50 = vunpack.c.h.bf16 %v472_v32  ;;  %v959_v54 = vadd.f32 %v831_v35, %v703_v42  ;;  %v840_v25 = vld [vmem:[%s1902_s24 + $0x2d8] sm:$0xff]  ;;  %v842_v33 = vld [vmem:[%s1902_s24 + $0x2e8] sm:$0xff]  ;;  %v395_v34 = vld [vmem:[%s1885_s5 + $0x2f0] sm:$0xff] }
  0xcd   : > { %v1087_v52 = vadd.f32 %v1913_v17, %v957_v40  ;;  %v1088_v53 = vadd.f32 %v1913_v17, %v958_v41  ;;  %v960_v55 = vadd.f32 %v832_v36, %v704_v43  ;;  %v707_v60 = vadd.f32 %v579_v49, %v387_v45  ;;  %v396_v35 = vld [vmem:[%s1885_s5 + $0x2f8] sm:$0xff]  ;;  %v477_v40 = vld [vmem:[%s1893_s14 + $0x180] sm:$0xff]  ;;  %v843_v45 = vld [vmem:[%s1902_s24 + $0x2f0] sm:$0xff] }
  0xce   : > { %v961_v58 = vadd.f32 %v833_v38, %v705_v47  ;;  %v962_v59 = vadd.f32 %v834_v44, %v706_v48  ;;  %v708_v61 = vadd.f32 %v580_v50, %v388_v46  ;;  %v1089_v1 = vadd.f32 %v1913_v17, %v959_v54  ;;  %v844_v46 = vld [vmem:[%s1902_s24 + $0x2f8] sm:$0xff] }
  0xcf   : > { %1215 = vst [vmem:[%s1931_s26 + $0x280] sm:$0xff] %v1087_v52  ;;  %1216 = vst [vmem:[%s1931_s26 + $0x288] sm:$0xff] %v1088_v53  ;;  %v1090_v2 = vadd.f32 %v1913_v17, %v960_v55  ;;  %v581_v3 = vunpack.c.l.bf16 %v473_v51  ;;  %v582_v5 = vunpack.c.h.bf16 %v473_v51  ;;  %v963_v9 = vadd.f32 %v835_v56, %v707_v60  ;;  %v397_v51 = vld [vmem:[%s1885_s5 + $0x300] sm:$0xff]  ;;  %v398_v52 = vld [vmem:[%s1885_s5 + $0x308] sm:$0xff] }
  0xd0   : > { %v1091_v7 = vadd.f32 %v1913_v17, %v961_v58  ;;  %v1092_v8 = vadd.f32 %v1913_v17, %v962_v59  ;;  %v964_v10 = vadd.f32 %v836_v57, %v708_v61  ;;  %1217 = vst [vmem:[%s1931_s26 + $0x290] sm:$0xff] %v1089_v1  ;;  %v583_v16 = vunpack.c.l.bf16 %v474_v0  ;;  %v478_v53 = vld [vmem:[%s1893_s14 + $0x188] sm:$0xff]  ;;  %v845_v57 = vld [vmem:[%s1902_s24 + $0x300] sm:$0xff]  ;;  %v479_v59 = vld [vmem:[%s1893_s14 + $0x190] sm:$0xff] }
  0xd1   : > { %1218 = vst [vmem:[%s1931_s26 + $0x298] sm:$0xff] %v1090_v2  ;;  %v709_v14 = vadd.f32 %v581_v3, %v389_v62  ;;  %v710_v15 = vadd.f32 %v582_v5, %v390_v63  ;;  %v584_v18 = vunpack.c.h.bf16 %v474_v0  ;;  %v1093_v22 = vadd.f32 %v1913_v17, %v963_v9  ;;  %v846_v0 = vld [vmem:[%s1902_s24 + $0x308] sm:$0xff]  ;;  %v399_v1 = vld [vmem:[%s1885_s5 + $0x310] sm:$0xff]  ;;  %v400_v2 = vld [vmem:[%s1885_s5 + $0x318] sm:$0xff] }
  0xd2   : > { %1219 = vst [vmem:[%s1931_s26 + $0x2a0] sm:$0xff] %v1091_v7  ;;  %1220 = vst [vmem:[%s1931_s26 + $0x2a8] sm:$0xff] %v1092_v8  ;;  %v1094_v23 = vadd.f32 %v1913_v17, %v964_v10  ;;  %v585_v26 = vunpack.c.l.bf16 %v475_v6  ;;  %v586_v28 = vunpack.c.h.bf16 %v475_v6  ;;  %v711_v31 = vadd.f32 %v583_v16, %v391_v12  ;;  %v401_v7 = vld [vmem:[%s1885_s5 + $0x320] sm:$0xff]  ;;  %v402_v8 = vld [vmem:[%s1885_s5 + $0x328] sm:$0xff] }
  0xd3   : > { %v965_v29 = vadd.f32 %v837_v4, %v709_v14  ;;  %v966_v30 = vadd.f32 %v838_v11, %v710_v15  ;;  %v712_v32 = vadd.f32 %v584_v18, %v392_v13  ;;  %1221 = vst [vmem:[%s1931_s26 + $0x2b0] sm:$0xff] %v1093_v22  ;;  %v587_v38 = vunpack.c.l.bf16 %v476_v21  ;;  %v480_v9 = vld [vmem:[%s1893_s14 + $0x198] sm:$0xff]  ;;  %v847_v12 = vld [vmem:[%s1902_s24 + $0x310] sm:$0xff]  ;;  %v849_v15 = vld [vmem:[%s1902_s24 + $0x320] sm:$0xff] }
  0xd4   : > { %1222 = vst [vmem:[%s1931_s26 + $0x2b8] sm:$0xff] %v1094_v23  ;;  %v713_v36 = vadd.f32 %v585_v26, %v393_v19  ;;  %v714_v37 = vadd.f32 %v586_v28, %v394_v20  ;;  %v588_v39 = vunpack.c.h.bf16 %v476_v21  ;;  %v967_v43 = vadd.f32 %v839_v24, %v711_v31  ;;  %v848_v13 = vld [vmem:[%s1902_s24 + $0x318] sm:$0xff]  ;;  %v850_v22 = vld [vmem:[%s1902_s24 + $0x328] sm:$0xff]  ;;  %v403_v23 = vld [vmem:[%s1885_s5 + $0x330] sm:$0xff] }
  0xd5   : > { %v1095_v41 = vadd.f32 %v1913_v17, %v965_v29  ;;  %v1096_v42 = vadd.f32 %v1913_v17, %v966_v30  ;;  %v968_v44 = vadd.f32 %v840_v25, %v712_v32  ;;  %v715_v49 = vadd.f32 %v587_v38, %v395_v34  ;;  %v404_v24 = vld [vmem:[%s1885_s5 + $0x338] sm:$0xff]  ;;  %v481_v29 = vld [vmem:[%s1893_s14 + $0x1a0] sm:$0xff]  ;;  %v851_v34 = vld [vmem:[%s1902_s24 + $0x330] sm:$0xff] }
  0xd6   : > { %v969_v47 = vadd.f32 %v841_v27, %v713_v36  ;;  %v970_v48 = vadd.f32 %v842_v33, %v714_v37  ;;  %v716_v50 = vadd.f32 %v588_v39, %v396_v35  ;;  %v1097_v54 = vadd.f32 %v1913_v17, %v967_v43  ;;  %v852_v35 = vld [vmem:[%s1902_s24 + $0x338] sm:$0xff] }
  0xd7   : > { %1223 = vst [vmem:[%s1931_s26 + $0x2c0] sm:$0xff] %v1095_v41  ;;  %1224 = vst [vmem:[%s1931_s26 + $0x2c8] sm:$0xff] %v1096_v42  ;;  %v1098_v55 = vadd.f32 %v1913_v17, %v968_v44  ;;  %v589_v56 = vunpack.c.l.bf16 %v477_v40  ;;  %v590_v58 = vunpack.c.h.bf16 %v477_v40  ;;  %v971_v62 = vadd.f32 %v843_v45, %v715_v49  ;;  %v405_v40 = vld [vmem:[%s1885_s5 + $0x340] sm:$0xff]  ;;  %v406_v41 = vld [vmem:[%s1885_s5 + $0x348] sm:$0xff] }
  0xd8   : > { %v1099_v60 = vadd.f32 %v1913_v17, %v969_v47  ;;  %v1100_v61 = vadd.f32 %v1913_v17, %v970_v48  ;;  %v972_v63 = vadd.f32 %v844_v46, %v716_v50  ;;  %1225 = vst [vmem:[%s1931_s26 + $0x2d0] sm:$0xff] %v1097_v54  ;;  %v591_v5 = vunpack.c.l.bf16 %v478_v53  ;;  %v482_v42 = vld [vmem:[%s1893_s14 + $0x1a8] sm:$0xff]  ;;  %v853_v46 = vld [vmem:[%s1902_s24 + $0x340] sm:$0xff]  ;;  %v483_v48 = vld [vmem:[%s1893_s14 + $0x1b0] sm:$0xff] }
  0xd9   : > { %1226 = vst [vmem:[%s1931_s26 + $0x2d8] sm:$0xff] %v1098_v55  ;;  %v717_v3 = vadd.f32 %v589_v56, %v397_v51  ;;  %v718_v4 = vadd.f32 %v590_v58, %v398_v52  ;;  %v592_v6 = vunpack.c.h.bf16 %v478_v53  ;;  %v1101_v10 = vadd.f32 %v1913_v17, %v971_v62  ;;  %v854_v53 = vld [vmem:[%s1902_s24 + $0x348] sm:$0xff]  ;;  %v407_v54 = vld [vmem:[%s1885_s5 + $0x350] sm:$0xff]  ;;  %v408_v55 = vld [vmem:[%s1885_s5 + $0x358] sm:$0xff] }
  0xda   : > { %1227 = vst [vmem:[%s1931_s26 + $0x2e0] sm:$0xff] %v1099_v60  ;;  %1228 = vst [vmem:[%s1931_s26 + $0x2e8] sm:$0xff] %v1100_v61  ;;  %v1102_v11 = vadd.f32 %v1913_v17, %v972_v63  ;;  %v593_v14 = vunpack.c.l.bf16 %v479_v59  ;;  %v594_v16 = vunpack.c.h.bf16 %v479_v59  ;;  %v719_v20 = vadd.f32 %v591_v5, %v399_v1  ;;  %v409_v60 = vld [vmem:[%s1885_s5 + $0x360] sm:$0xff]  ;;  %v410_v61 = vld [vmem:[%s1885_s5 + $0x368] sm:$0xff] }
  0xdb   : > { %v973_v18 = vadd.f32 %v845_v57, %v717_v3  ;;  %v974_v19 = vadd.f32 %v846_v0, %v718_v4  ;;  %v720_v21 = vadd.f32 %v592_v6, %v400_v2  ;;  %1229 = vst [vmem:[%s1931_s26 + $0x2f0] sm:$0xff] %v1101_v10  ;;  %v595_v27 = vunpack.c.l.bf16 %v480_v9  ;;  %v484_v62 = vld [vmem:[%s1893_s14 + $0x1b8] sm:$0xff]  ;;  %v855_v1 = vld [vmem:[%s1902_s24 + $0x350] sm:$0xff]  ;;  %v857_v4 = vld [vmem:[%s1902_s24 + $0x360] sm:$0xff] }
  0xdc   : > { %1230 = vst [vmem:[%s1931_s26 + $0x2f8] sm:$0xff] %v1102_v11  ;;  %v721_v25 = vadd.f32 %v593_v14, %v401_v7  ;;  %v722_v26 = vadd.f32 %v594_v16, %v402_v8  ;;  %v596_v28 = vunpack.c.h.bf16 %v480_v9  ;;  %v975_v32 = vadd.f32 %v847_v12, %v719_v20  ;;  %v856_v2 = vld [vmem:[%s1902_s24 + $0x358] sm:$0xff]  ;;  %v858_v10 = vld [vmem:[%s1902_s24 + $0x368] sm:$0xff]  ;;  %v411_v11 = vld [vmem:[%s1885_s5 + $0x370] sm:$0xff] }
  0xdd   : > { %v1103_v30 = vadd.f32 %v1913_v17, %v973_v18  ;;  %v1104_v31 = vadd.f32 %v1913_v17, %v974_v19  ;;  %v976_v33 = vadd.f32 %v848_v13, %v720_v21  ;;  %v723_v38 = vadd.f32 %v595_v27, %v403_v23  ;;  %v412_v12 = vld [vmem:[%s1885_s5 + $0x378] sm:$0xff]  ;;  %v485_v18 = vld [vmem:[%s1893_s14 + $0x1c0] sm:$0xff]  ;;  %v859_v23 = vld [vmem:[%s1902_s24 + $0x370] sm:$0xff] }
  0xde   : > { %v977_v36 = vadd.f32 %v849_v15, %v721_v25  ;;  %v978_v37 = vadd.f32 %v850_v22, %v722_v26  ;;  %v724_v39 = vadd.f32 %v596_v28, %v404_v24  ;;  %v1105_v43 = vadd.f32 %v1913_v17, %v975_v32  ;;  %v860_v24 = vld [vmem:[%s1902_s24 + $0x378] sm:$0xff] }
  0xdf   : > { %1231 = vst [vmem:[%s1931_s26 + $0x300] sm:$0xff] %v1103_v30  ;;  %1232 = vst [vmem:[%s1931_s26 + $0x308] sm:$0xff] %v1104_v31  ;;  %v1106_v44 = vadd.f32 %v1913_v17, %v976_v33  ;;  %v597_v45 = vunpack.c.l.bf16 %v481_v29  ;;  %v598_v47 = vunpack.c.h.bf16 %v481_v29  ;;  %v979_v51 = vadd.f32 %v851_v34, %v723_v38  ;;  %v413_v29 = vld [vmem:[%s1885_s5 + $0x380] sm:$0xff]  ;;  %v414_v30 = vld [vmem:[%s1885_s5 + $0x388] sm:$0xff] }
  0xe0   : > { %v1107_v49 = vadd.f32 %v1913_v17, %v977_v36  ;;  %v1108_v50 = vadd.f32 %v1913_v17, %v978_v37  ;;  %v980_v52 = vadd.f32 %v852_v35, %v724_v39  ;;  %1233 = vst [vmem:[%s1931_s26 + $0x310] sm:$0xff] %v1105_v43  ;;  %v599_v58 = vunpack.c.l.bf16 %v482_v42  ;;  %v486_v31 = vld [vmem:[%s1893_s14 + $0x1c8] sm:$0xff]  ;;  %v861_v35 = vld [vmem:[%s1902_s24 + $0x380] sm:$0xff]  ;;  %v487_v37 = vld [vmem:[%s1893_s14 + $0x1d0] sm:$0xff] }
  0xe1   : > { %1234 = vst [vmem:[%s1931_s26 + $0x318] sm:$0xff] %v1106_v44  ;;  %v725_v56 = vadd.f32 %v597_v45, %v405_v40  ;;  %v726_v57 = vadd.f32 %v598_v47, %v406_v41  ;;  %v600_v59 = vunpack.c.h.bf16 %v482_v42  ;;  %v1109_v63 = vadd.f32 %v1913_v17, %v979_v51  ;;  %v862_v42 = vld [vmem:[%s1902_s24 + $0x388] sm:$0xff]  ;;  %v415_v43 = vld [vmem:[%s1885_s5 + $0x390] sm:$0xff]  ;;  %v416_v44 = vld [vmem:[%s1885_s5 + $0x398] sm:$0xff] }
  0xe2   : > { %1235 = vst [vmem:[%s1931_s26 + $0x320] sm:$0xff] %v1107_v49  ;;  %1236 = vst [vmem:[%s1931_s26 + $0x328] sm:$0xff] %v1108_v50  ;;  %v1110_v0 = vadd.f32 %v1913_v17, %v980_v52  ;;  %v601_v3 = vunpack.c.l.bf16 %v483_v48  ;;  %v602_v5 = vunpack.c.h.bf16 %v483_v48  ;;  %v727_v8 = vadd.f32 %v599_v58, %v407_v54  ;;  %v417_v49 = vld [vmem:[%s1885_s5 + $0x3a0] sm:$0xff]  ;;  %v418_v50 = vld [vmem:[%s1885_s5 + $0x3a8] sm:$0xff] }
  0xe3   : > { %v981_v6 = vadd.f32 %v853_v46, %v725_v56  ;;  %v982_v7 = vadd.f32 %v854_v53, %v726_v57  ;;  %v728_v9 = vadd.f32 %v600_v59, %v408_v55  ;;  %1237 = vst [vmem:[%s1931_s26 + $0x330] sm:$0xff] %v1109_v63  ;;  %v603_v15 = vunpack.c.l.bf16 %v484_v62  ;;  %v488_v51 = vld [vmem:[%s1893_s14 + $0x1d8] sm:$0xff]  ;;  %v863_v54 = vld [vmem:[%s1902_s24 + $0x390] sm:$0xff]  ;;  %v865_v57 = vld [vmem:[%s1902_s24 + $0x3a0] sm:$0xff] }
  0xe4   : > { %1238 = vst [vmem:[%s1931_s26 + $0x338] sm:$0xff] %v1110_v0  ;;  %v729_v13 = vadd.f32 %v601_v3, %v409_v60  ;;  %v730_v14 = vadd.f32 %v602_v5, %v410_v61  ;;  %v604_v16 = vunpack.c.h.bf16 %v484_v62  ;;  %v983_v21 = vadd.f32 %v855_v1, %v727_v8  ;;  %v864_v55 = vld [vmem:[%s1902_s24 + $0x398] sm:$0xff]  ;;  %v866_v63 = vld [vmem:[%s1902_s24 + $0x3a8] sm:$0xff]  ;;  %v419_v0 = vld [vmem:[%s1885_s5 + $0x3b0] sm:$0xff] }
  0xe5   : > { %v1111_v19 = vadd.f32 %v1913_v17, %v981_v6  ;;  %v1112_v20 = vadd.f32 %v1913_v17, %v982_v7  ;;  %v984_v22 = vadd.f32 %v856_v2, %v728_v9  ;;  %v731_v27 = vadd.f32 %v603_v15, %v411_v11  ;;  %v420_v1 = vld [vmem:[%s1885_s5 + $0x3b8] sm:$0xff]  ;;  %v489_v6 = vld [vmem:[%s1893_s14 + $0x1e0] sm:$0xff]  ;;  %v867_v11 = vld [vmem:[%s1902_s24 + $0x3b0] sm:$0xff] }
  0xe6   : > { %v985_v25 = vadd.f32 %v857_v4, %v729_v13  ;;  %v986_v26 = vadd.f32 %v858_v10, %v730_v14  ;;  %v732_v28 = vadd.f32 %v604_v16, %v412_v12  ;;  %v1113_v32 = vadd.f32 %v1913_v17, %v983_v21  ;;  %v868_v12 = vld [vmem:[%s1902_s24 + $0x3b8] sm:$0xff] }
  0xe7   : > { %1239 = vst [vmem:[%s1931_s26 + $0x340] sm:$0xff] %v1111_v19  ;;  %1240 = vst [vmem:[%s1931_s26 + $0x348] sm:$0xff] %v1112_v20  ;;  %v1114_v33 = vadd.f32 %v1913_v17, %v984_v22  ;;  %v605_v34 = vunpack.c.l.bf16 %v485_v18  ;;  %v606_v36 = vunpack.c.h.bf16 %v485_v18  ;;  %v987_v40 = vadd.f32 %v859_v23, %v731_v27  ;;  %v421_v18 = vld [vmem:[%s1885_s5 + $0x3c0] sm:$0xff]  ;;  %v422_v19 = vld [vmem:[%s1885_s5 + $0x3c8] sm:$0xff] }
  0xe8   : > { %v1115_v38 = vadd.f32 %v1913_v17, %v985_v25  ;;  %v1116_v39 = vadd.f32 %v1913_v17, %v986_v26  ;;  %v988_v41 = vadd.f32 %v860_v24, %v732_v28  ;;  %1241 = vst [vmem:[%s1931_s26 + $0x350] sm:$0xff] %v1113_v32  ;;  %v607_v47 = vunpack.c.l.bf16 %v486_v31  ;;  %v490_v20 = vld [vmem:[%s1893_s14 + $0x1e8] sm:$0xff]  ;;  %v869_v24 = vld [vmem:[%s1902_s24 + $0x3c0] sm:$0xff]  ;;  %v491_v26 = vld [vmem:[%s1893_s14 + $0x1f0] sm:$0xff] }
  0xe9   : > { %1242 = vst [vmem:[%s1931_s26 + $0x358] sm:$0xff] %v1114_v33  ;;  %v733_v45 = vadd.f32 %v605_v34, %v413_v29  ;;  %v734_v46 = vadd.f32 %v606_v36, %v414_v30  ;;  %v608_v48 = vunpack.c.h.bf16 %v486_v31  ;;  %v1117_v52 = vadd.f32 %v1913_v17, %v987_v40  ;;  %v870_v31 = vld [vmem:[%s1902_s24 + $0x3c8] sm:$0xff]  ;;  %v423_v32 = vld [vmem:[%s1885_s5 + $0x3d0] sm:$0xff]  ;;  %v424_v33 = vld [vmem:[%s1885_s5 + $0x3d8] sm:$0xff] }
  0xea   : > { %1243 = vst [vmem:[%s1931_s26 + $0x360] sm:$0xff] %v1115_v38  ;;  %1244 = vst [vmem:[%s1931_s26 + $0x368] sm:$0xff] %v1116_v39  ;;  %v1118_v53 = vadd.f32 %v1913_v17, %v988_v41  ;;  %v609_v56 = vunpack.c.l.bf16 %v487_v37  ;;  %v610_v58 = vunpack.c.h.bf16 %v487_v37  ;;  %v735_v61 = vadd.f32 %v607_v47, %v415_v43  ;;  %v425_v38 = vld [vmem:[%s1885_s5 + $0x3e0] sm:$0xff]  ;;  %v426_v39 = vld [vmem:[%s1885_s5 + $0x3e8] sm:$0xff] }
  0xeb   : > { %v989_v59 = vadd.f32 %v861_v35, %v733_v45  ;;  %v990_v60 = vadd.f32 %v862_v42, %v734_v46  ;;  %v736_v62 = vadd.f32 %v608_v48, %v416_v44  ;;  %1245 = vst [vmem:[%s1931_s26 + $0x370] sm:$0xff] %v1117_v52  ;;  %v611_v4 = vunpack.c.l.bf16 %v488_v51  ;;  %v492_v40 = vld [vmem:[%s1893_s14 + $0x1f8] sm:$0xff]  ;;  %v871_v43 = vld [vmem:[%s1902_s24 + $0x3d0] sm:$0xff]  ;;  %v873_v46 = vld [vmem:[%s1902_s24 + $0x3e0] sm:$0xff] }
  0xec   : > { %1246 = vst [vmem:[%s1931_s26 + $0x378] sm:$0xff] %v1118_v53  ;;  %v737_v2 = vadd.f32 %v609_v56, %v417_v49  ;;  %v738_v3 = vadd.f32 %v610_v58, %v418_v50  ;;  %v612_v5 = vunpack.c.h.bf16 %v488_v51  ;;  %v991_v9 = vadd.f32 %v863_v54, %v735_v61  ;;  %v872_v44 = vld [vmem:[%s1902_s24 + $0x3d8] sm:$0xff]  ;;  %v874_v52 = vld [vmem:[%s1902_s24 + $0x3e8] sm:$0xff]  ;;  %v427_v53 = vld [vmem:[%s1885_s5 + $0x3f0] sm:$0xff] }
  0xed   : > { %v1119_v7 = vadd.f32 %v1913_v17, %v989_v59  ;;  %v1120_v8 = vadd.f32 %v1913_v17, %v990_v60  ;;  %v992_v10 = vadd.f32 %v864_v55, %v736_v62  ;;  %v739_v15 = vadd.f32 %v611_v4, %v419_v0  ;;  %v428_v54 = vld [vmem:[%s1885_s5 + $0x3f8] sm:$0xff] }
  0xee   : > { %v993_v13 = vadd.f32 %v865_v57, %v737_v2  ;;  %v994_v14 = vadd.f32 %v866_v63, %v738_v3  ;;  %v740_v16 = vadd.f32 %v612_v5, %v420_v1  ;;  %v1121_v21 = vadd.f32 %v1913_v17, %v991_v9  ;;  %v875_v63 = vld [vmem:[%s1902_s24 + $0x3f0] sm:$0xff]  ;;  %v876_v0 = vld [vmem:[%s1902_s24 + $0x3f8] sm:$0xff] }
  0xef   : > { %1247 = vst [vmem:[%s1931_s26 + $0x380] sm:$0xff] %v1119_v7  ;;  %1248 = vst [vmem:[%s1931_s26 + $0x388] sm:$0xff] %v1120_v8  ;;  %v1122_v22 = vadd.f32 %v1913_v17, %v992_v10  ;;  %v613_v23 = vunpack.c.l.bf16 %v489_v6  ;;  %v614_v25 = vunpack.c.h.bf16 %v489_v6  ;;  %v995_v29 = vadd.f32 %v867_v11, %v739_v15 }
  0xf0   : > { %v1123_v27 = vadd.f32 %v1913_v17, %v993_v13  ;;  %v1124_v28 = vadd.f32 %v1913_v17, %v994_v14  ;;  %v996_v30 = vadd.f32 %v868_v12, %v740_v16  ;;  %1249 = vst [vmem:[%s1931_s26 + $0x390] sm:$0xff] %v1121_v21  ;;  %v615_v36 = vunpack.c.l.bf16 %v490_v20 }
  0xf1   : > { %1250 = vst [vmem:[%s1931_s26 + $0x398] sm:$0xff] %v1122_v22  ;;  %v741_v34 = vadd.f32 %v613_v23, %v421_v18  ;;  %v742_v35 = vadd.f32 %v614_v25, %v422_v19  ;;  %v616_v37 = vunpack.c.h.bf16 %v490_v20  ;;  %v1125_v41 = vadd.f32 %v1913_v17, %v995_v29 }
  0xf2   : > { %1251 = vst [vmem:[%s1931_s26 + $0x3a0] sm:$0xff] %v1123_v27  ;;  %1252 = vst [vmem:[%s1931_s26 + $0x3a8] sm:$0xff] %v1124_v28  ;;  %v1126_v42 = vadd.f32 %v1913_v17, %v996_v30  ;;  %v617_v45 = vunpack.c.l.bf16 %v491_v26  ;;  %v618_v47 = vunpack.c.h.bf16 %v491_v26  ;;  %v743_v50 = vadd.f32 %v615_v36, %v423_v32 }
  0xf3   : > { %v997_v48 = vadd.f32 %v869_v24, %v741_v34  ;;  %v998_v49 = vadd.f32 %v870_v31, %v742_v35  ;;  %v744_v51 = vadd.f32 %v616_v37, %v424_v33  ;;  %1253 = vst [vmem:[%s1931_s26 + $0x3b0] sm:$0xff] %v1125_v41  ;;  %v619_v57 = vunpack.c.l.bf16 %v492_v40 }
  0xf4   : > { %1254 = vst [vmem:[%s1931_s26 + $0x3b8] sm:$0xff] %v1126_v42  ;;  %v745_v55 = vadd.f32 %v617_v45, %v425_v38  ;;  %v746_v56 = vadd.f32 %v618_v47, %v426_v39  ;;  %v620_v58 = vunpack.c.h.bf16 %v492_v40  ;;  %v999_v61 = vadd.f32 %v871_v43, %v743_v50 }
  0xf5   : > { %v1127_v59 = vadd.f32 %v1913_v17, %v997_v48  ;;  %v1128_v60 = vadd.f32 %v1913_v17, %v998_v49  ;;  %v1000_v62 = vadd.f32 %v872_v44, %v744_v51  ;;  %v747_v3 = vadd.f32 %v619_v57, %v427_v53 }
  0xf6   : > { %v1001_v1 = vadd.f32 %v873_v46, %v745_v55  ;;  %v1002_v2 = vadd.f32 %v874_v52, %v746_v56  ;;  %v748_v4 = vadd.f32 %v620_v58, %v428_v54  ;;  %v1129_v5 = vadd.f32 %v1913_v17, %v999_v61 }
  0xf7   : > { %1255 = vst [vmem:[%s1931_s26 + $0x3c0] sm:$0xff] %v1127_v59  ;;  %1256 = vst [vmem:[%s1931_s26 + $0x3c8] sm:$0xff] %v1128_v60  ;;  %v1130_v6 = vadd.f32 %v1913_v17, %v1000_v62  ;;  %v1003_v9 = vadd.f32 %v875_v63, %v747_v3 }
  0xf8   : > { %v1131_v7 = vadd.f32 %v1913_v17, %v1001_v1  ;;  %v1132_v8 = vadd.f32 %v1913_v17, %v1002_v2  ;;  %v1004_v10 = vadd.f32 %v876_v0, %v748_v4  ;;  %1257 = vst [vmem:[%s1931_s26 + $0x3d0] sm:$0xff] %v1129_v5 }
  0xf9   : > { %1258 = vst [vmem:[%s1931_s26 + $0x3d8] sm:$0xff] %v1130_v6  ;;  %v1133_v11 = vadd.f32 %v1913_v17, %v1003_v9 }
  0xfa   : > { %1259 = vst [vmem:[%s1931_s26 + $0x3e0] sm:$0xff] %v1131_v7  ;;  %1260 = vst [vmem:[%s1931_s26 + $0x3e8] sm:$0xff] %v1132_v8  ;;  %v1134_v12 = vadd.f32 %v1913_v17, %v1004_v10 }
  0xfb   : > { %1261 = vst [vmem:[%s1931_s26 + $0x3f0] sm:$0xff] %v1133_v11 }
  0xfc   : > { %1262 = vst [vmem:[%s1931_s26 + $0x3f8] sm:$0xff] %v1134_v12 }
  0xfd   : > { %1593 = shalt.err (!%p1590_p10)
}
  0xfe   : > { %s1594_s30 = scalar_lea.hbm %s2482_s6, 16384  ;;  %s1598_s23 = scalar_lea.hbm %s2538_s4, 32768 }
  0xff   : > { %p1595_p11 = scmp.ne.s32.totalorder %s2482_s6, %s1594_s30  ;;  %p1599_p5 = scmp.lt.u32.totalorder %s2482_s6, %s2538_s4 }
 0x100   : > { %p1600_p2 = scmp.lt.u32.totalorder %s1598_s23, %s1594_s30  ;;  %p1602_p13 = scmp.lt.u32.totalorder %s1594_s30, %s2482_s6 }
 0x101   : > { %p1596_p4 = pnand %p1595_p11, %p2552_p7 }
 0x102   : > { %p1601_p1 = por %p1600_p2, %p1599_p5 }
 0x103   : > { %p1597_p3 = pneg %p1596_p4 }
 0x104   : > { %p1603_p9 = por %p1602_p13, %p1601_p1 }
 0x106   : > { %p1604_p6 = pnand %p1603_p9, %p1597_p3 }
 0x108   : > { %1607 = shalt.err (!%p1604_p6)
}
 0x109   : > { %s1660_s9 = smov 2048   ;;  %s1661_s24 = smov 128  }
 0x10a   : > { %1434 = dma.vmem_to_hbm [thread:$0]  (%p2552_p7), %s2484_s7, 16384, %s2482_s6, %s1264_s29, %s1660_s9, %s1660_s9, %s1661_s24  }
 0x10b PF: > { %s1293_s26 = sand.u32 1, %s1638_s17   ;;  %p2553_p12 = scmp.ne.s32.totalorder %s2544_s28, 0 }
 0x10c   : > { %p2554_p0 = scmp.ge.s32.totalorder %s1650_s20, 2  ;;  %s1294_s12 = scalar_lea.sflag [#allocation5], %s1293_s26 }
 0x10e   : > { %p1447_p8 = pnand %p2554_p0, %p2553_p12 }
 0x110   : > { %1633 = dma.done.wait (!%p1447_p8), %s1294_s12, 16384  }
 0x111   : > { %1635 = vsyncadd (!%p1447_p8), %s1294_s12, 4294950912  ;;  %p21_p10 = scmp.ge.s32.totalorder %s1715_s22, 4   ;;  %s2555_s17 = smov %s1642_s18 }
 0x112   : > { %s2556_s18 = smov %s1646_s19  ;;  %s2557_s19 = smov %s1727_s25 }
 0x113   : > { %s2558_s20 = smov %s1715_s22  ;;  %23 = sbr.rel (!%p21_p10) target bundleno = 10 (0xa), region = 105 }
 0x11a   :  { %1299 = vsyncpa [#allocation4], 1 }
 0x11b   :  { %1301 = vsyncpa [#allocation4 + $0x1], 1 }
 0x11c   :  { %1302 = vsyncpa [#allocation7], 1 }
 0x11d   :  { %1304 = vsyncpa [#allocation7 + $0x1], 1 }
 0x11e   :  { %1305 = vsyncpa [#allocation5], 1 }
 0x11f   :  { %1307 = vsyncpa [#allocation5 + $0x1], 1 }

</bundles_post_ra>
